<compile_context>
chip_gen: v7x
topology: tpu7x:2x2x1
jax: 0.10.0
libtpu: 0.0.40
codegen_flags: <defaults>
</compile_context>

<pallas_src>
import jax
import jax.numpy as jnp
from jax import lax
from jax.experimental import pallas as pl
from jax.experimental.pallas import tpu as pltpu


def _swish(v):
    return v * jax.nn.sigmoid(v)


def _bf(a):
    return a.astype(jnp.bfloat16)


def _round_up(n, m):
    return ((n + m - 1) // m) * m


def _pad2(a, rows, cols):
    return jnp.pad(a, ((0, rows - a.shape[0]), (0, cols - a.shape[1])))


def _pad_last2(a, rows, cols):
    pads = [(0, 0)] * (a.ndim - 2) + [(0, rows - a.shape[-2]), (0, cols - a.shape[-1])]
    return jnp.pad(a, pads)


def _vmem_limit_bytes():
    cap = 64 * 1024 * 1024
    try:
        info = pltpu.get_tpu_info()
        cap = int(getattr(info, "vmem_capacity_bytes", cap))
    except Exception:
        pass
    # headroom; ~100 MiB on 128 MiB parts (v5e/v6e), ~56 MiB on v7x's 64 MiB.
    return max(32 * 1024 * 1024, min(cap - 8 * 1024 * 1024, 100 * 1024 * 1024))


# ---------------------------------------------------------------------------
# Kernel 1 (edge phase 1, grid over E tiles, "parallel"):
#   x_ji = act(lin_ji(x)); x_kj = act(lin_down(act(lin_kj(x)) * rbf_proj))
# ---------------------------------------------------------------------------
def _edge_phase1_kernel(x_ref, rbf_ref, w_jikj_ref, b_jikj_ref, w_rbf_ref, w_down_ref,
                        xji_ref, xkj_ref):
    hp = xji_ref.shape[1]
    y = _swish(jnp.dot(_bf(x_ref[...]), w_jikj_ref[...],
                       preferred_element_type=jnp.float32) + b_jikj_ref[...])
    x_ji = y[:, :hp]            # hp is a multiple of 128 -> tile-aligned split
    x_kj = y[:, hp:]
    rbf_proj = jnp.dot(_bf(rbf_ref[...]), w_rbf_ref[...],
                       preferred_element_type=jnp.float32)
    x_kj = x_kj * rbf_proj
    xji_ref[...] = x_ji
    xkj_ref[...] = _swish(jnp.dot(_bf(x_kj), w_down_ref[...],
                                  preferred_element_type=jnp.float32))


# ---------------------------------------------------------------------------
# Kernel 2 (sbf projection, grid over T tiles, "parallel"):
#   sbf_proj = sbf @ (w_sbf1 @ w_sbf2)   (weights pre-fused host-side)
# ---------------------------------------------------------------------------
def _sbf_proj_kernel(sbf_ref, w_sbf_ref, out_ref):
    out_ref[...] = jnp.dot(_bf(sbf_ref[...]), w_sbf_ref[...],
                           preferred_element_type=jnp.float32)


# ---------------------------------------------------------------------------
# Kernel 3 (triplet gather/scale/scatter, grid over T tiles, "arbitrary"):
#   acc[idx_ji[t]] += x_kj[idx_kj[t]] * sbf_proj[t]
# x_kj table and the accumulator stay resident in VMEM across the whole T grid.
# ---------------------------------------------------------------------------
def _triplet_scatter_kernel(idx_kj_ref, idx_ji_ref, xkj_ref, sbfp_ref, acc_ref):
    t = pl.program_id(0)
    t_tile = sbfp_ref.shape[0]

    @pl.when(t == 0)
    def _():
        acc_ref[...] = jnp.zeros_like(acc_ref)

    base = t * t_tile

    def body(r, carry):
        src = idx_kj_ref[base + r]                    # SMEM scalar reads
        dst = idx_ji_ref[base + r]
        vals = xkj_ref[src] * sbfp_ref[r]             # (1, IP) f32
        acc_ref[dst] = acc_ref[dst] + vals            # f32 segment accumulation
        return carry

    lax.fori_loop(0, t_tile, body, 0)


# ---------------------------------------------------------------------------
# Kernel 4 (edge phase 2, grid over E tiles, "parallel"):
#   h = x_ji + act(lin_up(x_kj_sc)); residuals; h = act(lin(h)) + x; residuals
# ---------------------------------------------------------------------------
def _edge_phase2_kernel(x_ref, xji_ref, xkjsc_ref, w_up_ref,
                        rb_w1_ref, rb_b1_ref, rb_w2_ref, rb_b2_ref,
                        w_lin_ref, b_lin_ref,
                        ra_w1_ref, ra_b1_ref, ra_w2_ref, ra_b2_ref,
                        out_ref):
    x_kj = _swish(jnp.dot(_bf(xkjsc_ref[...]), w_up_ref[...],
                          preferred_element_type=jnp.float32))
    h = xji_ref[...] + x_kj

    def residual(h, w1_ref, b1_ref, w2_ref, b2_ref):
        for l in range(w1_ref.shape[0]):
            tv = _swish(jnp.dot(_bf(h), w1_ref[l],
                                preferred_element_type=jnp.float32) + b1_ref[l])
            tv = _swish(jnp.dot(_bf(tv), w2_ref[l],
                                preferred_element_type=jnp.float32) + b2_ref[l])
            h = h + tv
        return h

    h = residual(h, rb_w1_ref, rb_b1_ref, rb_w2_ref, rb_b2_ref)
    h = _swish(jnp.dot(_bf(h), w_lin_ref[...],
                       preferred_element_type=jnp.float32) + b_lin_ref[...]) + x_ref[...]
    h = residual(h, ra_w1_ref, ra_b1_ref, ra_w2_ref, ra_b2_ref)
    out_ref[...] = h.astype(out_ref.dtype)


# ---------------------------------------------------------------------------
# Wrapper
# ---------------------------------------------------------------------------
def interaction_ppg_block(x, rbf, sbf, idx_kj, idx_ji, params, *, e_tile=256, t_tile=256):
    E, H = x.shape
    T = idx_kj.shape[0]
    I = params["w_down"].shape[1]
    rbf_in = rbf.shape[1]
    sbf_in = sbf.shape[1]
    L_b = params["rb_w1"].shape[0]
    L_a = params["ra_w1"].shape[0]

    # lane-dense padded feature sizes (multiples of 128) and row padding to tile sizes
    HP = _round_up(H, 128)
    IP = _round_up(I, 128)
    RP = _round_up(rbf_in, 128)
    SP = _round_up(sbf_in, 128)
    E_pad = _round_up(E, e_tile)
    T_pad = _round_up(T, t_tile)
    nE = E_pad // e_tile
    nT = T_pad // t_tile

    f32 = jnp.float32
    vmem_limit = _vmem_limit_bytes()
    dsem_par = pltpu.CompilerParams(dimension_semantics=("parallel",),
                                    vmem_limit_bytes=vmem_limit)
    dsem_arb = pltpu.CompilerParams(dimension_semantics=("arbitrary",),
                                    vmem_limit_bytes=vmem_limit)

    # ---- host-side weight fusion + zero padding (zero pads keep semantics exact) ----
    w_jikj = jnp.concatenate([_pad2(params["w_ji"], HP, HP),
                              _pad2(params["w_kj"], HP, HP)], axis=1)        # [HP, 2HP]
    b_jikj = jnp.concatenate([_pad2(params["b_ji"], 1, HP),
                              _pad2(params["b_kj"], 1, HP)], axis=1)         # [1, 2HP]
    w_rbf = _pad2(params["w_rbf1"] @ params["w_rbf2"], RP, HP)               # fused chain
    w_sbf = _pad2(params["w_sbf1"] @ params["w_sbf2"], SP, IP)               # fused chain
    w_down = _pad2(params["w_down"], HP, IP)
    w_up = _pad2(params["w_up"], IP, HP)
    rb_w1 = _pad_last2(params["rb_w1"], HP, HP); rb_b1 = _pad_last2(params["rb_b1"], 1, HP)
    rb_w2 = _pad_last2(params["rb_w2"], HP, HP); rb_b2 = _pad_last2(params["rb_b2"], 1, HP)
    ra_w1 = _pad_last2(params["ra_w1"], HP, HP); ra_b1 = _pad_last2(params["ra_b1"], 1, HP)
    ra_w2 = _pad_last2(params["ra_w2"], HP, HP); ra_b2 = _pad_last2(params["ra_b2"], 1, HP)
    w_lin = _pad2(params["w_lin"], HP, HP); b_lin = _pad2(params["b_lin"], 1, HP)

    x_p = _pad2(x.astype(f32), E_pad, HP)
    rbf_p = _pad2(rbf.astype(f32), E_pad, RP)
    sbf_p = _pad2(sbf.astype(f32), T_pad, SP)       # padded triplet rows are all-zero
    idx_kj_p = jnp.pad(idx_kj.astype(jnp.int32), (0, T_pad - T))
    idx_ji_p = jnp.pad(idx_ji.astype(jnp.int32), (0, T_pad - T))

    def resident(shape):
        return pl.BlockSpec(shape, lambda i, _s=shape: tuple(0 for _ in _s))

    # ---- kernel 1: edge phase 1 ----
    cost1 = pl.CostEstimate(
        flops=int(2 * E_pad * (HP * 2 * HP + RP * HP + HP * IP)),
        transcendentals=int(E_pad * (2 * HP + IP)),
        bytes_accessed=int(4 * E_pad * (2 * HP + RP + IP)
                           + 2 * (HP * 2 * HP + RP * HP + HP * IP)))
    x_ji, x_kj_down = pl.pallas_call(
        _edge_phase1_kernel,
        grid=(nE,),
        in_specs=[
            pl.BlockSpec((e_tile, HP), lambda i: (i, 0)),
            pl.BlockSpec((e_tile, RP), lambda i: (i, 0)),
            resident((HP, 2 * HP)),
            resident((1, 2 * HP)),
            resident((RP, HP)),
            resident((HP, IP)),
        ],
        out_specs=[
            pl.BlockSpec((e_tile, HP), lambda i: (i, 0)),
            pl.BlockSpec((e_tile, IP), lambda i: (i, 0)),
        ],
        out_shape=[
            jax.ShapeDtypeStruct((E_pad, HP), f32),
            jax.ShapeDtypeStruct((E_pad, IP), f32),
        ],
        cost_estimate=cost1,
        compiler_params=dsem_par,
    )(x_p, rbf_p, _bf(w_jikj), b_jikj, _bf(w_rbf), _bf(w_down))

    # ---- kernel 2: sbf projection ----
    sbf_proj = pl.pallas_call(
        _sbf_proj_kernel,
        grid=(nT,),
        in_specs=[pl.BlockSpec((t_tile, SP), lambda i: (i, 0)),
                  resident((SP, IP))],
        out_specs=pl.BlockSpec((t_tile, IP), lambda i: (i, 0)),
        out_shape=jax.ShapeDtypeStruct((T_pad, IP), f32),
        compiler_params=dsem_par,
    )(sbf_p, _bf(w_sbf))

    # ---- kernel 3: gather / scale / scatter-sum (scalar-prefetched indices) ----
    x_kj_sc = pl.pallas_call(
        _triplet_scatter_kernel,
        grid_spec=pltpu.PrefetchScalarGridSpec(
            num_scalar_prefetch=2,
            grid=(nT,),
            in_specs=[
                pl.BlockSpec((E_pad, 1, IP), lambda t, ikj, iji: (0, 0, 0)),
                pl.BlockSpec((t_tile, 1, IP), lambda t, ikj, iji: (t, 0, 0)),
            ],
            out_specs=pl.BlockSpec((E_pad, 1, IP), lambda t, ikj, iji: (0, 0, 0)),
        ),
        out_shape=jax.ShapeDtypeStruct((E_pad, 1, IP), f32),
        compiler_params=dsem_arb,
    )(idx_kj_p, idx_ji_p,
      x_kj_down.reshape(E_pad, 1, IP),
      sbf_proj.reshape(T_pad, 1, IP))
    x_kj_sc = x_kj_sc.reshape(E_pad, IP)

    # ---- kernel 4: edge phase 2 ----
    n_hh = 2 * (L_b + L_a) + 1
    cost4 = pl.CostEstimate(
        flops=int(2 * E_pad * HP * (IP + n_hh * HP)),
        transcendentals=int(E_pad * HP * (n_hh + 1)),
        bytes_accessed=int(4 * E_pad * (3 * HP + IP) + 2 * HP * (IP + n_hh * HP)))
    out_p = pl.pallas_call(
        _edge_phase2_kernel,
        grid=(nE,),
        in_specs=[
            pl.BlockSpec((e_tile, HP), lambda i: (i, 0)),    # x (skip)
            pl.BlockSpec((e_tile, HP), lambda i: (i, 0)),    # x_ji
            pl.BlockSpec((e_tile, IP), lambda i: (i, 0)),    # x_kj_sc
            resident((IP, HP)),                              # w_up
            resident((L_b, HP, HP)), resident((L_b, 1, HP)),
            resident((L_b, HP, HP)), resident((L_b, 1, HP)),
            resident((HP, HP)), resident((1, HP)),
            resident((L_a, HP, HP)), resident((L_a, 1, HP)),
            resident((L_a, HP, HP)), resident((L_a, 1, HP)),
        ],
        out_specs=pl.BlockSpec((e_tile, HP), lambda i: (i, 0)),
        out_shape=jax.ShapeDtypeStruct((E_pad, HP), f32),
        cost_estimate=cost4,
        compiler_params=dsem_par,
    )(x_p, x_ji, x_kj_sc, _bf(w_up),
      _bf(rb_w1), rb_b1, _bf(rb_w2), rb_b2,
      _bf(w_lin), b_lin,
      _bf(ra_w1), ra_b1, _bf(ra_w2), ra_b2)

    return out_p[:E, :H]


# ---------------------------------------------------------------------------
# Params / reference / test harness
# ---------------------------------------------------------------------------
def make_params(key, hidden, int_emb, basis, num_spherical, num_radial,
                bond_channels, num_before_skip):
    """Deterministic synthetic params. Weights stored as [in, out] (pre-transposed)."""
    H, I, B = hidden, int_emb, basis
    rbf_in = num_radial + bond_channels
    sbf_in = num_spherical * num_radial
    L = num_before_skip

    keys = jax.random.split(key, 32)
    k = iter(keys)

    def w(shape, scale=0.1):
        return (scale * jax.random.normal(next(k), shape)).astype(jnp.float32)

    return {
        "w_ji": w((H, H)), "b_ji": jnp.zeros((1, H), jnp.float32),
        "w_kj": w((H, H)), "b_kj": jnp.zeros((1, H), jnp.float32),
        "w_rbf1": w((rbf_in, B)), "w_rbf2": w((B, H)),
        "w_sbf1": w((sbf_in, B)), "w_sbf2": w((B, I)),
        "w_down": w((H, I)), "w_up": w((I, H)),
        "rb_w1": w((L, H, H)), "rb_b1": jnp.zeros((L, 1, H), jnp.float32),
        "rb_w2": w((L, H, H)), "rb_b2": jnp.zeros((L, 1, H), jnp.float32),
        "w_lin": w((H, H)), "b_lin": jnp.zeros((1, H), jnp.float32),
        # module uses num_before_skip for layers_after_skip as well (as written)
        "ra_w1": w((L, H, H)), "ra_b1": jnp.zeros((L, 1, H), jnp.float32),
        "ra_w2": w((L, H, H)), "ra_b2": jnp.zeros((L, 1, H), jnp.float32),
    }


def reference_jax(x, rbf, sbf, idx_kj, idx_ji, params):
    """Pure-f32, unfused reference (matches the PyTorch module semantics)."""
    sw = _swish
    E = x.shape[0]
    x_ji = sw(x @ params["w_ji"] + params["b_ji"])
    x_kj = sw(x @ params["w_kj"] + params["b_kj"])
    r = rbf @ params["w_rbf1"] @ params["w_rbf2"]
    x_kj = x_kj * r
    x_kj = sw(x_kj @ params["w_down"])
    s = sbf @ params["w_sbf1"] @ params["w_sbf2"]
    x_kj_t = x_kj[idx_kj] * s
    x_kj_sc = jax.ops.segment_sum(x_kj_t, idx_ji, num_segments=E)
    x_kj_up = sw(x_kj_sc @ params["w_up"])
    h = x_ji + x_kj_up
    for l in range(params["rb_w1"].shape[0]):
        t = sw(h @ params["rb_w1"][l] + params["rb_b1"][l])
        t = sw(t @ params["rb_w2"][l] + params["rb_b2"][l])
        h = h + t
    h = sw(h @ params["w_lin"] + params["b_lin"]) + x
    for l in range(params["ra_w1"].shape[0]):
        t = sw(h @ params["ra_w1"][l] + params["ra_b1"][l])
        t = sw(t @ params["ra_w2"][l] + params["ra_b2"][l])
        h = h + t
    return h


if __name__ == "__main__":
    hidden_channels = 64
    int_emb_size = 32
    basis_emb_size = 8
    num_spherical = 4
    num_radial = 8
    bond_channels = 4
    num_before_skip = 1
    E = 600    # edges  -> 3 E-tiles of 256 (padded)
    T = 1500   # triplets -> 6 T-tiles of 256 (padded)

    key = jax.random.PRNGKey(0)
    k_x, k_rbf, k_sbf, k_kj, k_ji, k_p = jax.random.split(key, 6)

    x = jax.random.normal(k_x, (E, hidden_channels), jnp.float32)
    rbf = jax.random.normal(k_rbf, (E, num_radial + bond_channels), jnp.float32)
    sbf = jax.random.normal(k_sbf, (T, num_spherical * num_radial), jnp.float32)
    idx_kj = jax.random.randint(k_kj, (T,), 0, E, jnp.int32)
    idx_ji = jax.random.randint(k_ji, (T,), 0, E, jnp.int32)

    params = make_params(k_p, hidden_channels, int_emb_size, basis_emb_size,
                         num_spherical, num_radial, bond_channels, num_before_skip)

    out = interaction_ppg_block(x, rbf, sbf, idx_kj, idx_ji, params,
                                e_tile=256, t_tile=256)
    out = jax.block_until_ready(out)

    ref = reference_jax(x, rbf, sbf, idx_kj, idx_ji, params)
    assert out.shape == (E, hidden_channels)
    # tolerance accommodates bf16 matmul operands with f32 accumulation
    assert jnp.allclose(out, ref, rtol=2e-2, atol=2e-2), "mismatch vs JAX reference"

    print("KERNEL_OK")
</pallas_src>

<mosaic_0001>
module attributes {stable_mosaic.version = 11 : i64} {
  func.func @_edge_phase1_kernel(%arg0: i32, %arg1: memref<256x128xf32, #tpu.memory_space<vmem>>, %arg2: memref<256x128xf32, #tpu.memory_space<vmem>>, %arg3: memref<128x256xbf16, #tpu.memory_space<vmem>>, %arg4: memref<1x256xf32, #tpu.memory_space<vmem>>, %arg5: memref<128x128xbf16, #tpu.memory_space<vmem>>, %arg6: memref<128x128xbf16, #tpu.memory_space<vmem>>, %arg7: memref<256x128xf32, #tpu.memory_space<vmem>>, %arg8: memref<256x128xf32, #tpu.memory_space<vmem>>) attributes {dimension_semantics = [#tpu.dimension_semantics<parallel>], iteration_bounds = array<i64: 3>, scalar_prefetch = 0 : i64, scratch_operands = 0 : i64, tpu.core_type = #tpu.core_type<tc>, window_params = [{transform_indices = @transform_0, window_bounds = array<i64: 256, 128>}, {transform_indices = @transform_1, window_bounds = array<i64: 256, 128>}, {pipeline_mode = #tpu.pipeline_mode<synchronous>, transform_indices = @transform_2, window_bounds = array<i64: 128, 256>}, {pipeline_mode = #tpu.pipeline_mode<synchronous>, transform_indices = @transform_3, window_bounds = array<i64: 1, 256>}, {pipeline_mode = #tpu.pipeline_mode<synchronous>, transform_indices = @transform_4, window_bounds = array<i64: 128, 128>}, {pipeline_mode = #tpu.pipeline_mode<synchronous>, transform_indices = @transform_5, window_bounds = array<i64: 128, 128>}, {transform_indices = @transform_6, window_bounds = array<i64: 256, 128>}, {transform_indices = @transform_7, window_bounds = array<i64: 256, 128>}]} {
    %c0 = arith.constant 0 : index
    %c0_0 = arith.constant 0 : index
    %0 = vector.load %arg1[%c0, %c0_0] : memref<256x128xf32, #tpu.memory_space<vmem>>, vector<256x128xf32>
    %1 = arith.truncf %0 : vector<256x128xf32> to vector<256x128xbf16>
    %c0_1 = arith.constant 0 : index
    %c0_2 = arith.constant 0 : index
    %2 = vector.load %arg3[%c0_1, %c0_2] : memref<128x256xbf16, #tpu.memory_space<vmem>>, vector<128x256xbf16>
    %cst = arith.constant dense<0.000000e+00> : vector<256x256xf32>
    %3 = tpu.matmul %1, %2, %cst {dimension_numbers = #tpu.dot_dimension_numbers<[1], [0], [0], [1], [0, 0, 1, 1], [], []>} : vector<256x128xbf16>, vector<128x256xbf16>, vector<256x256xf32> -> vector<256x256xf32>
    %c0_3 = arith.constant 0 : index
    %c0_4 = arith.constant 0 : index
    %4 = vector.load %arg4[%c0_3, %c0_4] : memref<1x256xf32, #tpu.memory_space<vmem>>, vector<1x256xf32>
    %5 = vector.broadcast %4 : vector<1x256xf32> to vector<256x256xf32>
    %6 = arith.addf %3, %5 : vector<256x256xf32>
    %7 = arith.negf %6 : vector<256x256xf32>
    %8 = math.exp %7 : vector<256x256xf32>
    %cst_5 = arith.constant 1.000000e+00 : f32
    %9 = vector.broadcast %cst_5 : f32 to vector<256x256xf32>
    %10 = arith.addf %9, %8 : vector<256x256xf32>
    %11 = arith.divf %9, %10 : vector<256x256xf32>
    %12 = arith.mulf %6, %11 : vector<256x256xf32>
    %13 = vector.extract_strided_slice %12 {offsets = [0, 0], sizes = [256, 128], strides = [1, 1]} : vector<256x256xf32> to vector<256x128xf32>
    %14 = vector.extract_strided_slice %12 {offsets = [0, 128], sizes = [256, 128], strides = [1, 1]} : vector<256x256xf32> to vector<256x128xf32>
    %c0_6 = arith.constant 0 : index
    %c0_7 = arith.constant 0 : index
    %15 = vector.load %arg2[%c0_6, %c0_7] : memref<256x128xf32, #tpu.memory_space<vmem>>, vector<256x128xf32>
    %16 = arith.truncf %15 : vector<256x128xf32> to vector<256x128xbf16>
    %c0_8 = arith.constant 0 : index
    %c0_9 = arith.constant 0 : index
    %17 = vector.load %arg5[%c0_8, %c0_9] : memref<128x128xbf16, #tpu.memory_space<vmem>>, vector<128x128xbf16>
    %cst_10 = arith.constant dense<0.000000e+00> : vector<256x128xf32>
    %18 = tpu.matmul %16, %17, %cst_10 {dimension_numbers = #tpu.dot_dimension_numbers<[1], [0], [0], [1], [0, 0, 1, 1], [], []>} : vector<256x128xbf16>, vector<128x128xbf16>, vector<256x128xf32> -> vector<256x128xf32>
    %19 = arith.mulf %14, %18 : vector<256x128xf32>
    %c0_11 = arith.constant 0 : index
    %c0_12 = arith.constant 0 : index
    %20 = vector.load %arg7[%c0_11, %c0_12] : memref<256x128xf32, #tpu.memory_space<vmem>>, vector<256x128xf32>
    tpu.vector_store %arg7[%c0_11, %c0_12], %13 {strides = array<i32>} : memref<256x128xf32, #tpu.memory_space<vmem>>, vector<256x128xf32>,
    %21 = arith.truncf %19 : vector<256x128xf32> to vector<256x128xbf16>
    %c0_13 = arith.constant 0 : index
    %c0_14 = arith.constant 0 : index
    %22 = vector.load %arg6[%c0_13, %c0_14] : memref<128x128xbf16, #tpu.memory_space<vmem>>, vector<128x128xbf16>
    %cst_15 = arith.constant dense<0.000000e+00> : vector<256x128xf32>
    %23 = tpu.matmul %21, %22, %cst_15 {dimension_numbers = #tpu.dot_dimension_numbers<[1], [0], [0], [1], [0, 0, 1, 1], [], []>} : vector<256x128xbf16>, vector<128x128xbf16>, vector<256x128xf32> -> vector<256x128xf32>
    %24 = arith.negf %23 : vector<256x128xf32>
    %25 = math.exp %24 : vector<256x128xf32>
    %cst_16 = arith.constant 1.000000e+00 : f32
    %26 = vector.broadcast %cst_16 : f32 to vector<256x128xf32>
    %27 = arith.addf %26, %25 : vector<256x128xf32>
    %28 = arith.divf %26, %27 : vector<256x128xf32>
    %29 = arith.mulf %23, %28 : vector<256x128xf32>
    %c0_17 = arith.constant 0 : index
    %c0_18 = arith.constant 0 : index
    %30 = vector.load %arg8[%c0_17, %c0_18] : memref<256x128xf32, #tpu.memory_space<vmem>>, vector<256x128xf32>
    tpu.vector_store %arg8[%c0_17, %c0_18], %29 {strides = array<i32>} : memref<256x128xf32, #tpu.memory_space<vmem>>, vector<256x128xf32>,
    return
  }
  func.func @transform_0(%arg0: i32) -> (i32, i32) {
    %c0_i32 = arith.constant 0 : i32
    %c0_i32_0 = arith.constant 0 : i32
    return %arg0, %c0_i32 : i32, i32
  }
  func.func @transform_1(%arg0: i32) -> (i32, i32) {
    %c0_i32 = arith.constant 0 : i32
    %c0_i32_0 = arith.constant 0 : i32
    return %arg0, %c0_i32 : i32, i32
  }
  func.func @transform_2(%arg0: i32) -> (i32, i32) {
    %c0_i32 = arith.constant 0 : i32
    %c0_i32_0 = arith.constant 0 : i32
    %c0_i32_1 = arith.constant 0 : i32
    return %c0_i32, %c0_i32_0 : i32, i32
  }
  func.func @transform_3(%arg0: i32) -> (i32, i32) {
    %c0_i32 = arith.constant 0 : i32
    %c0_i32_0 = arith.constant 0 : i32
    %c0_i32_1 = arith.constant 0 : i32
    return %c0_i32, %c0_i32_0 : i32, i32
  }
  func.func @transform_4(%arg0: i32) -> (i32, i32) {
    %c0_i32 = arith.constant 0 : i32
    %c0_i32_0 = arith.constant 0 : i32
    %c0_i32_1 = arith.constant 0 : i32
    return %c0_i32, %c0_i32_0 : i32, i32
  }
  func.func @transform_5(%arg0: i32) -> (i32, i32) {
    %c0_i32 = arith.constant 0 : i32
    %c0_i32_0 = arith.constant 0 : i32
    %c0_i32_1 = arith.constant 0 : i32
    return %c0_i32, %c0_i32_0 : i32, i32
  }
  func.func @transform_6(%arg0: i32) -> (i32, i32) {
    %c0_i32 = arith.constant 0 : i32
    %c0_i32_0 = arith.constant 0 : i32
    return %arg0, %c0_i32 : i32, i32
  }
  func.func @transform_7(%arg0: i32) -> (i32, i32) {
    %c0_i32 = arith.constant 0 : i32
    %c0_i32_0 = arith.constant 0 : i32
    return %arg0, %c0_i32 : i32, i32
  }
}

</mosaic_0001>

<bundles_post_ra>
// kernel: tpu_custom_call.1
= control target key start
LH: loop header
LB: loop body
LE: loop exit
PB: predicated region body
PF: predicated region fallthrough
CT: control target
= control target key end

     0   :  { %s4305_s0 = inlined_call_operand.hbm [shape: f32[768,128], index: 0, kind: input, shape index: {}]   ;;  %s4306_s1 = inlined_call_operand.hbm [shape: f32[768,128], index: 1, kind: input, shape index: {}]   ;;  %s4307_s2 = inlined_call_operand.hbm [shape: bf16[128,256], index: 2, kind: input, shape index: {}]   ;;  %s4308_s3 = inlined_call_operand.vmem [shape: f32[1,256], index: 3, kind: input, shape index: {}]   ;;  %s4309_s4 = inlined_call_operand.hbm [shape: bf16[128,128], index: 4, kind: input, shape index: {}]   ;;  %s4310_s5 = inlined_call_operand.hbm [shape: bf16[128,128], index: 5, kind: input, shape index: {}]   ;;  %s4311_s6 = inlined_call_operand.hbm [shape: f32[768,128], index: 6, kind: output, shape index: {0}]   ;;  %s4312_s7 = inlined_call_operand.hbm [shape: f32[768,128], index: 7, kind: output, shape index: {1}]  }
   0x1   :  { %4321 = sst [smem:[#allocation22_spill]] %s4305_s0 }
   0x2   :  { %4322 = sst [smem:[#allocation23_spill]] %s4307_s2 }
   0x3   :  { %4323 = sst [smem:[#allocation24_spill]] %s4309_s4 }
   0x4   :  { %4324 = sst [smem:[#allocation25_spill]] %s4310_s5 }
   0x5   :  { %13 = vsyncpa [#allocation3], 0 }
   0x6   :  { %15 = vsyncpa [#allocation3 + $0x1], 0 }
   0x7   :  { %16 = vsyncpa [#allocation6], 0 }
   0x8   :  { %18 = vsyncpa [#allocation6 + $0x1], 0 }
   0x9   :  { %19 = vsyncpa [#allocation9], 0 }
   0xa   :  { %20 = vsyncpa [#allocation4], 0 }
   0xb   :  { %22 = vsyncpa [#allocation4 + $0x1], 0 }
   0xc   :  { %23 = vsyncpa [#allocation13], 0 }
   0xd   :  { %25 = vsyncpa [#allocation13 + $0x1], 0  ;;  %s3350_s24 = smov 0   ;;  %s3352_s25 = smov 0  }
   0xe   :  { %s3354_s26 = smov 0   ;;  %s3356_s27 = smov 0  }
   0xf LB: > { %s3371_s28 = sadd.s32 4294967295, %s3294_s27   ;;  %s2218_s29 = sadd.s32 4294967294, %s3294_s27   ;;  %s3294_s27 = sphi %s3356_s27, %s4353_s27   ;;  %s3290_s26 = sphi %s3354_s26, %s4352_s26   ;;  %s3286_s25 = sphi %s3352_s25, %s4351_s25   ;;  %s3282_s24 = sphi %s3350_s24, %s4350_s24  }
  0x10   : > { %p51_p0 = scmp.ne.s32.totalorder %s3286_s25, %s3282_s24  ;;  %p4313_p1 = scmp.eq.s32.totalorder %s3371_s28, 0 }
  0x11   : > { %p191_p3 = scmp.eq.s32.totalorder %s2218_s29, 2  ;;  %p2219_p5 = scmp.ge.s32.totalorder %s3294_s27, 1 }
  0x12   : > { %p3380_p4 = por %p4313_p1, %p51_p0  ;;  %p224_p7 = scmp.lt.s32.totalorder %s3294_s27, 4 }
  0x13   : > { %p3385_p6 = por %p191_p3, %p51_p0  ;;  %s3296_s10 = smov [#allocation7]  }
  0x14   : > { %s4325_s30 = scalar_select %p3380_p4, 1, 0 }
  0x15   : > { %s4326_s8 = scalar_select %p3385_p6, 1, 0 }
  0x16   : > { %p3390_p8 = pnand %p2219_p5, %p224_p7  ;;  %s236_s11 = sshll.u32 %s3296_s10, 4  ;;  %s237_s11 = int_to_ptr.vmem [resolvable:$true] %s236_s11 }
  0x17   : > { %4327 = sst [smem:[#allocation20_spill]] %s4326_s8  ;;  %s3297_s13 = smov [#allocation8]  }
  0x18   : > { %s4328_s9 = scalar_select %p3390_p8, 1, 0 }
  0x19   : > { %p2542_p9 = pneg %p3390_p8  ;;  %s252_s14 = sshll.u32 %s3297_s13, 4  ;;  %s3402_s14 = int_to_ptr.vmem [resolvable:$true] %s252_s14 }
  0x1a   : > { %s4330_s2 = sld [smem:[#allocation23_spill]] }
  0x1b   : > { %p3398_p10 = pnand %p2542_p9, %p4313_p1 }
  0x1d   : > { %p3412_p12 = pneg %p3398_p10 }
  0x20   : > { %s3040_s17 = scalar_lea.hbm %s4330_s2, 2048 }
  0x21   : > { %p3041_p11 = scmp.ne.s32.totalorder %s4330_s2, %s3040_s17  ;;  %p3047_p3 = scmp.lt.u32.totalorder %s3040_s17, %s4330_s2 }
  0x23   : > { %p3043_p13 = pnand %p3412_p12, %p3041_p11 }
  0x25   : > { %p3044_p0 = pneg %p3043_p13 }
  0x27   : > { %p3049_p5 = pnand %p3047_p3, %p3044_p0 }
  0x29   : > { %3052 = shalt.err (!%p3049_p5)
}
  0x2a   : > { %s3053_s23 = scalar_lea.vmem %s237_s11, 2048  ;;  %p3061_p2 = scmp.lt.s32.totalorder %s237_s11, %s237_s11 }
  0x2b   : > { %p3054_p7 = scmp.ne.s32.totalorder %s237_s11, %s3053_s23  ;;  %p3062_p6 = scmp.lt.s32.totalorder %s3053_s23, %s3053_s23 }
  0x2d   : > { %p3056_p9 = pnand %p3054_p7, %p3412_p12  ;;  %p3063_p4 = por %p3062_p6, %p3061_p2 }
  0x2f   : > { %p3057_p1 = pneg %p3056_p9 }
  0x31   : > { %p3064_p8 = pnand %p3063_p4, %p3057_p1 }
  0x33   : > { %3067 = shalt.err (!%p3064_p8)
}
  0x34   : > { %s4316_s29 = smov 128   ;;  %s4318_s10 = smov 8  }
  0x35   : > { %2545 = dma.hbm_to_vmem [thread:$0]  (!%p3398_p10), %s4330_s2, 2048, %s237_s11, [#allocation6], %s4316_s29, %s4316_s29, %s4318_s10  }
  0x36   : > { %s4332_s4 = sld [smem:[#allocation24_spill]] }
  0x3c   : > { %s3068_s18 = scalar_lea.hbm %s4332_s4, 1024 }
  0x3d   : > { %p3069_p1 = scmp.ne.s32.totalorder %s4332_s4, %s3068_s18  ;;  %p3075_p6 = scmp.lt.u32.totalorder %s3068_s18, %s4332_s4 }
  0x3f   : > { %p3071_p2 = pnand %p3069_p1, %p3412_p12 }
  0x41   : > { %p3072_p4 = pneg %p3071_p2 }
  0x43   : > { %p3077_p8 = pnand %p3075_p6, %p3072_p4 }
  0x45   : > { %3080 = shalt.err (!%p3077_p8)
}
  0x46   : > { %s3081_s11 = scalar_lea.vmem %s3402_s14, 1024  ;;  %p3089_p3 = scmp.lt.s32.totalorder %s3402_s14, %s3402_s14 }
  0x47   : > { %p3082_p11 = scmp.ne.s32.totalorder %s3402_s14, %s3081_s11  ;;  %p3090_p5 = scmp.lt.s32.totalorder %s3081_s11, %s3081_s11 }
  0x49   : > { %p3084_p13 = pnand %p3082_p11, %p3412_p12  ;;  %p3091_p7 = por %p3090_p5, %p3089_p3 }
  0x4b   : > { %p3085_p0 = pneg %p3084_p13 }
  0x4d   : > { %p3092_p9 = pnand %p3091_p7, %p3085_p0 }
  0x4f   : > { %3095 = shalt.err (!%p3092_p9)
}
  0x50   : > { %s3300_s13 = smov 64   ;;  %s3301_s15 = smov 4  }
  0x51   : > { %2548 = dma.hbm_to_vmem [thread:$0]  (!%p3398_p10), %s4332_s4, 1024, %s3402_s14, [#allocation9], %s3300_s13, %s3300_s13, %s3301_s15  }
  0x52   : > { %s3302_s18 = smov [#allocation10]   ;;  %s3455_s21 = sadd.s32 1, %s3294_s27  }
  0x53   : > { %s265_s19 = sshll.u32 %s3302_s18, 4  ;;  %s4333_s5 = sld [smem:[#allocation25_spill]]  ;;  %s266_s19 = int_to_ptr.vmem [resolvable:$true] %s265_s19 }
  0x59   : > { %s3096_s11 = scalar_lea.hbm %s4333_s5, 1024 }
  0x5a   : > { %p3097_p1 = scmp.ne.s32.totalorder %s4333_s5, %s3096_s11  ;;  %p3103_p6 = scmp.lt.u32.totalorder %s3096_s11, %s4333_s5 }
  0x5c   : > { %p3099_p2 = pnand %p3097_p1, %p3412_p12 }
  0x5e   : > { %p3100_p4 = pneg %p3099_p2 }
  0x60   : > { %p3105_p8 = pnand %p3103_p6, %p3100_p4 }
  0x62   : > { %3108 = shalt.err (!%p3105_p8)
}
  0x63   : > { %s3109_s14 = scalar_lea.vmem %s266_s19, 1024  ;;  %p3117_p3 = scmp.lt.s32.totalorder %s266_s19, %s266_s19 }
  0x64   : > { %p3110_p11 = scmp.ne.s32.totalorder %s266_s19, %s3109_s14  ;;  %p3118_p5 = scmp.lt.s32.totalorder %s3109_s14, %s3109_s14 }
  0x66   : > { %p3112_p13 = pnand %p3110_p11, %p3412_p12  ;;  %p3119_p7 = por %p3118_p5, %p3117_p3 }
  0x68   : > { %p3113_p0 = pneg %p3112_p13 }
  0x6a   : > { %p3120_p9 = pnand %p3119_p7, %p3113_p0 }
  0x6c   : > { %3123 = shalt.err (!%p3120_p9)
}
  0x6d   : > { %2551 = dma.hbm_to_vmem [thread:$0]  (!%p3398_p10), %s4333_s5, 1024, %s266_s19, [#allocation9], %s3300_s13, %s3300_s13, %s3301_s15  }
  0x6e   : > { %s35_s2 = ssub.s32 %s3294_s27, %s3455_s21  ;;  %s38_s8 = sadd.s32 1, %s3290_s26 }
  0x6f   : > { %p36_p12 = scmp.eq.s32.totalorder %s35_s2, 0  ;;  %p45_p1 = scmp.ne.s32.totalorder %s3290_s26, %s3286_s25 }
  0x70   : > { %p46_p2 = scmp.eq.s32.totalorder %s3294_s27, 0  ;;  %p2569_p4 = scmp.lt.s32.totalorder %s3294_s27, 3 }
  0x71   : > { %s3483_s12 = scalar_select %p36_p12, %s3290_s26, %s38_s8  }
  0x72   : > { %p47_p6 = por %p46_p2, %p45_p1  ;;  %p4335_p8 = scmp.eq.s32.totalorder %s3371_s28, 2 }
  0x73   : > { %4334 = sst [smem:[#allocation21_spill]] %s3483_s12  ;;  %s279_s16 = sand.u32 1, %s3290_s26  }
  0x74   : > { %p3487_p11 = por %p4335_p8, %p45_p1  ;;  %s2374_s17 = sshll.u32 %s3294_s27, 12 }
  0x75   : > { %s3493_s18 = sshll.u32 %s279_s16, 8  ;;  %s4337_s0 = sld [smem:[#allocation22_spill]] }
  0x76   : > { %s283_s19 = scalar_lea.vmem [#allocation2], %s3493_s18  ;;  %p3501_p10 = pnand %p2569_p4, %p47_p6 }
  0x77   : > { %s290_s23 = sshll.u32 %s283_s19, 4  ;;  %s3510_s10 = scalar_lea.hbm %s4306_s1, %s2374_s17  ;;  %s3505_s23 = int_to_ptr.vmem [resolvable:$true] %s290_s23 }
  0x78   : > { %s3512_s2 = scalar_lea.sflag [#allocation3], %s279_s16  ;;  %p3126_p0 = pneg %p3501_p10 }
  0x7b   : > { %s3498_s15 = scalar_lea.hbm %s4337_s0, %s2374_s17  ;;  %s3129_s19 = scalar_lea.hbm %s4337_s0, 12288 }
  0x7c   : > { %s3124_s8 = scalar_lea.hbm %s3498_s15, 4096  ;;  %p3130_p7 = scmp.lt.u32.totalorder %s3498_s15, %s4337_s0 }
  0x7d   : > { %p3125_p13 = scmp.ne.s32.totalorder %s3498_s15, %s3124_s8  ;;  %p3131_p9 = scmp.lt.u32.totalorder %s3129_s19, %s3124_s8 }
  0x7e   : > { %p3133_p1 = scmp.lt.u32.totalorder %s3124_s8, %s3498_s15 }
  0x7f   : > { %p3127_p3 = pnand %p3126_p0, %p3125_p13  ;;  %p3132_p12 = por %p3131_p9, %p3130_p7 }
  0x81   : > { %p3128_p5 = pneg %p3127_p3  ;;  %p3134_p2 = por %p3133_p1, %p3132_p12 }
  0x83   : > { %p3135_p4 = pnand %p3134_p2, %p3128_p5 }
  0x85   : > { %3138 = shalt.err (!%p3135_p4)
}
  0x86   : > { %s3139_s16 = scalar_lea.vmem %s3505_s23, 4096  ;;  %s3303_s17 = smov [#allocation2]  }
  0x87   : > { %p3140_p6 = scmp.ne.s32.totalorder %s3505_s23, %s3139_s16  ;;  %s3144_s14 = sshll.u32 %s3303_s17, 4  ;;  %s3145_s14 = int_to_ptr.vmem [resolvable:$false] %s3144_s14 }
  0x88   : > { %s3146_s4 = scalar_lea.vmem %s3145_s14, 8192  ;;  %p3147_p3 = scmp.lt.s32.totalorder %s3505_s23, %s3145_s14 }
  0x89   : > { %p3142_p8 = pnand %p3140_p6, %p3126_p0  ;;  %p3148_p7 = scmp.lt.s32.totalorder %s3146_s4, %s3139_s16 }
  0x8b   : > { %p3143_p13 = pneg %p3142_p8  ;;  %p3149_p9 = por %p3148_p7, %p3147_p3 }
  0x8d   : > { %p3150_p12 = pnand %p3149_p9, %p3143_p13 }
  0x8f   : > { %3153 = shalt.err (!%p3150_p12)
}
  0x90   : > { %s4339_s5 = smov 8   ;;  %s4340_s29 = smov 128  }
  0x91   : > { %2555 = dma.hbm_to_vmem [thread:$0]  (!%p3501_p10), %s3498_s15, 4096, %s3505_s23, %s3512_s2, %s4340_s29, %s4340_s29, %s4339_s5  }
  0x92   : > { %s304_s8 = scalar_lea.vmem [#allocation5], %s3493_s18  ;;  %s300_s13 = sand.u32 1, %s3294_s27  }
  0x93   : > { %s311_s22 = sshll.u32 %s304_s8, 4  ;;  %s3547_s19 = scalar_lea.sflag [#allocation6], %s300_s13  ;;  %s3545_s22 = int_to_ptr.vmem [resolvable:$true] %s311_s22 }
  0x94   : > { %s3154_s16 = scalar_lea.hbm %s3510_s10, 4096  ;;  %s3159_s4 = scalar_lea.hbm %s4306_s1, 12288 }
  0x95   : > { %p3155_p5 = scmp.ne.s32.totalorder %s3510_s10, %s3154_s16  ;;  %p3160_p4 = scmp.lt.u32.totalorder %s3510_s10, %s4306_s1 }
  0x96   : > { %p3161_p6 = scmp.lt.u32.totalorder %s3159_s4, %s3154_s16  ;;  %p3163_p13 = scmp.lt.u32.totalorder %s3154_s16, %s3510_s10 }
  0x97   : > { %p3157_p1 = pnand %p3155_p5, %p3126_p0 }
  0x98   : > { %p3162_p8 = por %p3161_p6, %p3160_p4 }
  0x99   : > { %p3158_p2 = pneg %p3157_p1 }
  0x9a   : > { %p3164_p3 = por %p3163_p13, %p3162_p8 }
  0x9c   : > { %p3165_p7 = pnand %p3164_p3, %p3158_p2 }
  0x9e   : > { %3168 = shalt.err (!%p3165_p7)
}
  0x9f   : > { %s3169_s18 = scalar_lea.vmem %s3545_s22, 4096  ;;  %s3304_s15 = smov [#allocation5]  }
  0xa0   : > { %p3170_p9 = scmp.ne.s32.totalorder %s3545_s22, %s3169_s18  ;;  %s3174_s23 = sshll.u32 %s3304_s15, 4  ;;  %s3175_s23 = int_to_ptr.vmem [resolvable:$false] %s3174_s23 }
  0xa1   : > { %s3176_s0 = scalar_lea.vmem %s3175_s23, 8192  ;;  %p3177_p1 = scmp.lt.s32.totalorder %s3545_s22, %s3175_s23 }
  0xa2   : > { %p3172_p12 = pnand %p3170_p9, %p3126_p0  ;;  %p3178_p4 = scmp.lt.s32.totalorder %s3176_s0, %s3169_s18 }
  0xa4   : > { %p3173_p5 = pneg %p3172_p12  ;;  %p3179_p6 = por %p3178_p4, %p3177_p1 }
  0xa6   : > { %p3180_p8 = pnand %p3179_p6, %p3173_p5 }
  0xa8   : > { %3183 = shalt.err (!%p3180_p8)
}
  0xa9   : > { %2558 = dma.hbm_to_vmem [thread:$0]  (!%p3501_p10), %s3510_s10, 4096, %s3545_s22, %s3547_s19, %s4340_s29, %s4340_s29, %s4339_s5  }
  0xaa   : > { %p4341_p0 = scmp.ne.s32.totalorder %s4328_s9, 0 }
  0xab   : > { %s3579_s12 = sand.u32 (!%p4341_p0), 1, %s3286_s25   ;;  %p4342_p2 = scmp.ne.s32.totalorder (!%p4341_p0), %s4325_s30, 0 }
  0xac   : > { %323 = sbr.rel (%p4341_p0) target bundleno = 867 (0x363), region = 44  ;;  %s3582_s2 = sshll.u32 (!%p4341_p0), %s3579_s12, 8 }
  0xad   : > { %s326_s11 = scalar_lea.sflag (!%p4341_p0), [#allocation3], %s3579_s12  ;;  %s3586_s8 = scalar_lea.vmem (!%p4341_p0), [#allocation2], %s3582_s2 }
  0xb3   : > { %3257 = dma.done.wait (%p4342_p2), %s326_s11, 4096  }
  0xb4   : > { %3259 = vsyncadd (%p4342_p2), %s326_s11, 4294963200  ;;  %s334_s9 = sand.u32 1, %s3371_s28   ;;  %s3594_s5 = scalar_lea.vmem [#allocation5], %s3582_s2 }
  0xb5   : > { %s335_s10 = scalar_lea.sflag [#allocation6], %s334_s9 }
  0xb6   : > { %3261 = dma.done.wait (%p4342_p2), %s335_s10, 4096  }
  0xb7   : > { %3263 = vsyncadd (%p4342_p2), %s335_s10, 4294963200  ;;  %p4343_p10 = scmp.eq.s32.totalorder %s3371_s28, 0 }
  0xb9   : > { %3265 = dma.done.wait (%p4343_p10), [#allocation6], 2048   ;;  %p4344_p13 = pmov %p4343_p10 }
  0xba   : > { %p4345_p3 = pmov %p4343_p10 }
  0xbb   : > { %3267 = vsyncadd (%p4344_p13), [#allocation6], 4294965248 }
  0xbc   : > { %3269 = dma.done.wait (%p4345_p3), [#allocation9], 2048   ;;  %p4346_p7 = pmov %p4345_p3 }
  0xbd   : > { %v3305_v0 = vmov 0   ;;  %v2616_v1 = vld [vmem:[#allocation7 + $0x4] ss:$8 sps:$4 sm:$0xff]   ;;  %v2618_v2 = vld [vmem:[#allocation7] ss:$8 sps:$4 sm:$0xff]   ;;  %v2642_v13 = vld [vmem:[#allocation8 + $0x10] sm:$0xff]  }
  0xbe   : > { %3271 = vsyncadd (%p4346_p7), [#allocation9], 4294965248  ;;  %584 = vmatprep.mubr.bf16.mxu0 %v3305_v0  ;;  %552 = vmatprep.subr.bf16.mxu0 %v2616_v1  ;;  %v2619_v3 = vld [vmem:[#allocation7 + $0x14] ss:$8 sps:$4 sm:$0xff]   ;;  %v2621_v4 = vld [vmem:[#allocation7 + $0x10] ss:$8 sps:$4 sm:$0xff]  }
  0xbf   : > { %553 = vmatpush1.bf16.msra.mxu0 %v2618_v2  ;;  %v2622_v5 = vld [vmem:[#allocation7 + $0x24] ss:$8 sps:$4 sm:$0xff]   ;;  %v2624_v6 = vld [vmem:[#allocation7 + $0x20] ss:$8 sps:$4 sm:$0xff]   ;;  %v2625_v7 = vld [vmem:[#allocation7 + $0x34] ss:$8 sps:$4 sm:$0xff]  }
  0xc0   : > { %554 = vmatprep.subr.bf16.mxu0 %v2619_v3  ;;  %v2627_v8 = vld [vmem:[#allocation7 + $0x30] ss:$8 sps:$4 sm:$0xff]   ;;  %v2640_v9 = vld [vmem:[#allocation8] sm:$0xff]   ;;  %v2641_v11 = vld [vmem:[#allocation8 + $0x8] sm:$0xff]   ;;  %s3786_s22 = scalar_lea.vmem [#allocation11], %s3582_s2  ;;  %s2376_s13 = sshll.u32 %s3371_s28, 12 }
  0xc1   : > { %v2628_v10 = vld [vmem:[#allocation7 + $0x44] ss:$8 sps:$4 sm:$0xff]   ;;  %2426 = vmatprep.subr.bf16.mxu1 %v2640_v9  ;;  %v2630_v12 = vld [vmem:[#allocation7 + $0x40] ss:$8 sps:$4 sm:$0xff]   ;;  %v2631_v14 = vld [vmem:[#allocation7 + $0x54] ss:$8 sps:$4 sm:$0xff]   ;;  %s4177_s14 = scalar_lea.hbm %s4311_s6, %s2376_s13 }
  0xc2   : > { %2427 = vmatpush3.bf16.msra.mxu1 %v2640_v9  ;;  %v2633_v15 = vld [vmem:[#allocation7 + $0x50] ss:$8 sps:$4 sm:$0xff]   ;;  %v2634_v17 = vld [vmem:[#allocation7 + $0x64] ss:$8 sps:$4 sm:$0xff]   ;;  %v2636_v21 = vld [vmem:[#allocation7 + $0x60] ss:$8 sps:$4 sm:$0xff]  }
  0xc3   : > { %555 = vmatpush1.bf16.msra.mxu0 %v2621_v4  ;;  %2428 = vmatprep.subr.bf16.mxu1 %v2641_v11  ;;  %v2643_v16 = vld [vmem:[#allocation8 + $0x18] sm:$0xff]   ;;  %v1193_v18 = vld [vmem:[%s3594_s5] sm:$0xff]  ;;  %v1194_v19 = vld [vmem:[%s3594_s5 + $0x8] sm:$0xff]  ;;  %s2046_s19 = sshll.u32 %s3786_s22, 4  ;;  %s2028_s4 = scalar_lea.sflag [#allocation4], %s3579_s12  ;;  %s4179_s19 = int_to_ptr.vmem [resolvable:$true] %s2046_s19 }
  0xc4   : > { %556 = vmatprep.subr.bf16.mxu0 %v2622_v5  ;;  %v1225_v20 = vpack.c.bf16 %v1194_v19, %v1193_v18  ;;  %v2644_v22 = vld [vmem:[#allocation8 + $0x20] sm:$0xff]   ;;  %v2637_v23 = vld [vmem:[#allocation7 + $0x74] ss:$8 sps:$4 sm:$0xff]   ;;  %v2639_v24 = vld [vmem:[#allocation7 + $0x70] ss:$8 sps:$4 sm:$0xff]   ;;  %s3184_s18 = scalar_lea.vmem %s4179_s19, 4096 }
  0xc5   : > { %v396_v25 = vld [vmem:[%s3586_s8] sm:$0xff]  ;;  %v397_v26 = vld [vmem:[%s3586_s8 + $0x8] sm:$0xff]  ;;  %v2646_v29 = vld [vmem:[#allocation8 + $0x30] sm:$0xff]   ;;  %p3185_p9 = scmp.ne.s32.totalorder %s4179_s19, %s3184_s18  ;;  %s3306_s15 = smov [#allocation11]  }
  0xc6   : > { %2429 = vmatpush3.bf16.msra.mxu1 %v2641_v11  ;;  %2442 = vmatprep.mubr.bf16.mxu1 %v1225_v20  ;;  %v2645_v27 = vld [vmem:[#allocation8 + $0x28] sm:$0xff]   ;;  %v428_v28 = vpack.c.bf16 %v397_v26, %v396_v25  ;;  %v398_v30 = vld [vmem:[%s3586_s8 + $0x10] sm:$0xff]  ;;  %v399_v31 = vld [vmem:[%s3586_s8 + $0x18] sm:$0xff]  ;;  %s3188_s23 = sshll.u32 %s3306_s15, 4  ;;  %s3189_s23 = int_to_ptr.vmem [resolvable:$false] %s3188_s23 }
  0xc7   : > { %557 = vmatpush1.bf16.msra.mxu0 %v2624_v6  ;;  %2430 = vmatprep.subr.bf16.mxu1 %v2642_v13  ;;  %v2647_v32 = vld [vmem:[#allocation8 + $0x38] sm:$0xff]   ;;  %v429_v33 = vpack.c.bf16 %v399_v31, %v398_v30  ;;  %v1195_v34 = vld [vmem:[%s3594_s5 + $0x10] sm:$0xff]  ;;  %v1197_v36 = vld [vmem:[%s3594_s5 + $0x20] sm:$0xff]  ;;  %p3186_p12 = pnand %p3185_p9, %p3487_p11  ;;  %s3190_s0 = scalar_lea.vmem %s3189_s23, 8192 }
  0xc8   : > { %558 = vmatprep.subr.bf16.mxu0 %v2625_v7  ;;  %v1196_v35 = vld [vmem:[%s3594_s5 + $0x18] sm:$0xff]  ;;  %v1198_v37 = vld [vmem:[%s3594_s5 + $0x28] sm:$0xff]  ;;  %v400_v38 = vld [vmem:[%s3586_s8 + $0x20] sm:$0xff]  ;;  %p3191_p1 = scmp.lt.s32.totalorder %s4179_s19, %s3189_s23  ;;  %p3192_p4 = scmp.lt.s32.totalorder %s3190_s0, %s3184_s18 }
  0xc9   : > { %v401_v39 = vld [vmem:[%s3586_s8 + $0x28] sm:$0xff]  ;;  %v1226_v40 = vpack.c.bf16 %v1196_v35, %v1195_v34  ;;  %v1227_v41 = vpack.c.bf16 %v1198_v37, %v1197_v36  ;;  %v1199_v43 = vld [vmem:[%s3594_s5 + $0x30] sm:$0xff]  ;;  %v1200_v44 = vld [vmem:[%s3594_s5 + $0x38] sm:$0xff]  ;;  %p3187_p5 = pneg %p3186_p12 }
  0xca   : > { %2431 = vmatpush3.bf16.msra.mxu1 %v2642_v13  ;;  %v430_v42 = vpack.c.bf16 %v401_v39, %v400_v38  ;;  %v1201_v45 = vld [vmem:[%s3594_s5 + $0x40] sm:$0xff]  ;;  %v1202_v46 = vld [vmem:[%s3594_s5 + $0x48] sm:$0xff]  ;;  %v1228_v47 = vpack.c.bf16 %v1200_v44, %v1199_v43  ;;  %v402_v49 = vld [vmem:[%s3586_s8 + $0x30] sm:$0xff]  ;;  %p3193_p6 = por %p3192_p4, %p3191_p1 }
  0xcb   : > { %559 = vmatpush1.bf16.msra.mxu0 %v2627_v8  ;;  %2432 = vmatprep.subr.bf16.mxu1 %v2643_v16  ;;  %v1229_v48 = vpack.c.bf16 %v1202_v46, %v1201_v45  ;;  %v403_v50 = vld [vmem:[%s3586_s8 + $0x38] sm:$0xff]  ;;  %v1203_v52 = vld [vmem:[%s3594_s5 + $0x50] sm:$0xff]  ;;  %v1205_v54 = vld [vmem:[%s3594_s5 + $0x60] sm:$0xff] }
  0xcc   : > { %560 = vmatprep.subr.bf16.mxu0 %v2628_v10  ;;  %v431_v51 = vpack.c.bf16 %v403_v50, %v402_v49  ;;  %v1204_v53 = vld [vmem:[%s3594_s5 + $0x58] sm:$0xff]  ;;  %v1206_v55 = vld [vmem:[%s3594_s5 + $0x68] sm:$0xff]  ;;  %v404_v58 = vld [vmem:[%s3586_s8 + $0x40] sm:$0xff]  ;;  %p3194_p8 = pnand %p3193_p6, %p3187_p5 }
  0xcd   : > { %v1230_v56 = vpack.c.bf16 %v1204_v53, %v1203_v52  ;;  %v1231_v57 = vpack.c.bf16 %v1206_v55, %v1205_v54  ;;  %v405_v59 = vld [vmem:[%s3586_s8 + $0x48] sm:$0xff]  ;;  %v1207_v61 = vld [vmem:[%s3594_s5 + $0x70] sm:$0xff]  ;;  %v1208_v62 = vld [vmem:[%s3594_s5 + $0x78] sm:$0xff] }
  0xce   : > { %2433 = vmatpush3.bf16.msra.mxu1 %v2643_v16  ;;  %v432_v60 = vpack.c.bf16 %v405_v59, %v404_v58  ;;  %v1209_v63 = vld [vmem:[%s3594_s5 + $0x80] sm:$0xff]  ;;  %v1210_v1 = vld [vmem:[%s3594_s5 + $0x88] sm:$0xff]  ;;  %v1232_v2 = vpack.c.bf16 %v1208_v62, %v1207_v61  ;;  %v406_v4 = vld [vmem:[%s3586_s8 + $0x50] sm:$0xff] }
  0xcf   : > { %561 = vmatpush1.bf16.msra.mxu0 %v2630_v12  ;;  %2434 = vmatprep.subr.bf16.mxu1 %v2644_v22  ;;  %v1233_v3 = vpack.c.bf16 %v1210_v1, %v1209_v63  ;;  %v407_v5 = vld [vmem:[%s3586_s8 + $0x58] sm:$0xff]  ;;  %v1211_v7 = vld [vmem:[%s3594_s5 + $0x90] sm:$0xff]  ;;  %v1213_v9 = vld [vmem:[%s3594_s5 + $0xa0] sm:$0xff] }
  0xd0   : > { %562 = vmatprep.subr.bf16.mxu0 %v2631_v14  ;;  %v433_v6 = vpack.c.bf16 %v407_v5, %v406_v4  ;;  %v1212_v8 = vld [vmem:[%s3594_s5 + $0x98] sm:$0xff]  ;;  %v1214_v10 = vld [vmem:[%s3594_s5 + $0xa8] sm:$0xff]  ;;  %v408_v13 = vld [vmem:[%s3586_s8 + $0x60] sm:$0xff] }
  0xd1   : > { %v1234_v11 = vpack.c.bf16 %v1212_v8, %v1211_v7  ;;  %v1235_v12 = vpack.c.bf16 %v1214_v10, %v1213_v9  ;;  %v409_v14 = vld [vmem:[%s3586_s8 + $0x68] sm:$0xff]  ;;  %v1215_v16 = vld [vmem:[%s3594_s5 + $0xb0] sm:$0xff]  ;;  %v1217_v18 = vld [vmem:[%s3594_s5 + $0xc0] sm:$0xff] }
  0xd2   : > { %2435 = vmatpush3.bf16.msra.mxu1 %v2644_v22  ;;  %v1218_v19 = vld [vmem:[%s3594_s5 + $0xc8] sm:$0xff]  ;;  %v410_v22 = vld [vmem:[%s3586_s8 + $0x70] sm:$0xff]  ;;  %v1220_v26 = vld [vmem:[%s3594_s5 + $0xd8] sm:$0xff] }
  0xd3   : > { %563 = vmatpush1.bf16.msra.mxu0 %v2633_v15  ;;  %2436 = vmatprep.subr.bf16.mxu1 %v2645_v27  ;;  %v434_v15 = vpack.c.bf16 %v409_v14, %v408_v13  ;;  %v1219_v25 = vld [vmem:[%s3594_s5 + $0xd0] sm:$0xff]  ;;  %v412_v31 = vld [vmem:[%s3586_s8 + $0x80] sm:$0xff]  ;;  %v1224_v35 = vld [vmem:[%s3594_s5 + $0xf8] sm:$0xff] }
  0xd4   : > { %564 = vmatprep.subr.bf16.mxu0 %v2634_v17  ;;  %v1216_v17 = vld [vmem:[%s3594_s5 + $0xb8] sm:$0xff]  ;;  %v1223_v34 = vld [vmem:[%s3594_s5 + $0xf0] sm:$0xff]  ;;  %v420_v46 = vld [vmem:[%s3586_s8 + $0xc0] sm:$0xff] }
  0xd5   : > { %v1236_v20 = vpack.c.bf16 %v1216_v17, %v1215_v16  ;;  %v1240_v36 = vpack.c.bf16 %v1224_v35, %v1223_v34  ;;  %v414_v37 = vld [vmem:[%s3586_s8 + $0x90] sm:$0xff]  ;;  %v415_v38 = vld [vmem:[%s3586_s8 + $0x98] sm:$0xff]  ;;  %v2648_v49 = vld [vmem:[#allocation10] sm:$0xff]  }
  0xd6   : > { %2437 = vmatpush3.bf16.msra.mxu1 %v2645_v27  ;;  %v1221_v27 = vld [vmem:[%s3594_s5 + $0xe0] sm:$0xff]  ;;  %v437_v39 = vpack.c.bf16 %v415_v38, %v414_v37  ;;  %v418_v43 = vld [vmem:[%s3586_s8 + $0xb0] sm:$0xff]  ;;  %v419_v44 = vld [vmem:[%s3586_s8 + $0xb8] sm:$0xff] }
  0xd7   : > { %565 = vmatpush1.bf16.msra.mxu0 %v2636_v21  ;;  %2438 = vmatprep.subr.bf16.mxu1 %v2646_v29  ;;  %v1237_v21 = vpack.c.bf16 %v1218_v19, %v1217_v18  ;;  %v439_v45 = vpack.c.bf16 %v419_v44, %v418_v43  ;;  %v422_v50 = vld [vmem:[%s3586_s8 + $0xd0] sm:$0xff]  ;;  %v2649_v53 = vld [vmem:[#allocation10 + $0x8] sm:$0xff]   ;;  %v424_v55 = vld [vmem:[%s3586_s8 + $0xe0] sm:$0xff] }
  0xd8   : > { %566 = vmatprep.subr.bf16.mxu0 %v2637_v23  ;;  %v411_v23 = vld [vmem:[%s3586_s8 + $0x78] sm:$0xff]  ;;  %v2650_v54 = vld [vmem:[#allocation10 + $0x10] sm:$0xff]   ;;  %v2652_v59 = vld [vmem:[#allocation10 + $0x20] sm:$0xff]  }
  0xd9   : > { %v2651_v58 = vld [vmem:[#allocation10 + $0x18] sm:$0xff]   ;;  %v2653_v63 = vld [vmem:[#allocation10 + $0x28] sm:$0xff]   ;;  %v2654_v1 = vld [vmem:[#allocation10 + $0x30] sm:$0xff]  }
  0xda   : > { %2439 = vmatpush3.bf16.msra.mxu1 %v2646_v29  ;;  %v1238_v29 = vpack.c.bf16 %v1220_v26, %v1219_v25  ;;  %v427_v61 = vld [vmem:[%s3586_s8 + $0xf8] sm:$0xff] }
  0xdb   : > { %567 = vmatpush1.bf16.msra.mxu0 %v2639_v24  ;;  %2440 = vmatprep.subr.bf16.mxu1 %v2647_v32  ;;  %v435_v24 = vpack.c.bf16 %v411_v23, %v410_v22 }
  0xde   : > { %585 = vmatmul.mubr.bf16.vlgmr.msra.gmra.mrb[0].mxu0 %v428_v28  ;;  %2441 = vmatpush3.bf16.msra.mxu1 %v2647_v32  ;;  %v1222_v28 = vld [vmem:[%s3594_s5 + $0xe8] sm:$0xff] }
  0xdf   : > { %594 = vmatprep.mubr.bf16.mxu0 %v3305_v0  ;;  %v1239_v30 = vpack.c.bf16 %v1222_v28, %v1221_v27  ;;  %v413_v32 = vld [vmem:[%s3586_s8 + $0x88] sm:$0xff]  ;;  %2474 = vmatprep.subr.bf16.mxu1 %v2648_v49 }
  0xe1   : > { %2443 = vmatmul.mubr.bf16.vlgmr.msra.gmra.mrb[0].mxu1 %v1226_v40  ;;  %v416_v40 = vld [vmem:[%s3586_s8 + $0xa0] sm:$0xff] }
  0xe2   : > { %2446 = vmatprep.mubr.bf16.mxu1 %v1227_v41  ;;  %v417_v41 = vld [vmem:[%s3586_s8 + $0xa8] sm:$0xff]  ;;  %2475 = vmatpush3.bf16.msra.mxu1 %v2648_v49 }
  0xe3   : > { %2476 = vmatprep.subr.bf16.mxu1 %v2649_v53 }
  0xe6   : > { %595 = vmatmul.mubr.bf16.gmra.mrb[4].mxu0 %v429_v33  ;;  %v436_v33 = vpack.c.bf16 %v413_v32, %v412_v31  ;;  %2477 = vmatpush3.bf16.msra.mxu1 %v2649_v53 }
  0xe7   : > { %604 = vmatprep.mubr.bf16.mxu0 %v3305_v0  ;;  %2478 = vmatprep.subr.bf16.mxu1 %v2650_v54 }
  0xe9   : > { %2447 = vmatmul.mubr.bf16.gmra.mrb[4].mxu1 %v1228_v47  ;;  %v421_v47 = vld [vmem:[%s3586_s8 + $0xc8] sm:$0xff] }
  0xea   : > { %2450 = vmatprep.mubr.bf16.mxu1 %v1229_v48  ;;  %v440_v48 = vpack.c.bf16 %v421_v47, %v420_v46  ;;  %2479 = vmatpush3.bf16.msra.mxu1 %v2650_v54 }
  0xeb   : > { %2480 = vmatprep.subr.bf16.mxu1 %v2651_v58 }
  0xee   : > { %605 = vmatmul.mubr.bf16.gmra.mrb[8].mxu0 %v430_v42  ;;  %v438_v42 = vpack.c.bf16 %v417_v41, %v416_v40  ;;  %2481 = vmatpush3.bf16.msra.mxu1 %v2651_v58 }
  0xef   : > { %614 = vmatprep.mubr.bf16.mxu0 %v3305_v0  ;;  %2482 = vmatprep.subr.bf16.mxu1 %v2652_v59 }
  0xf1   : > { %2451 = vmatmul.mubr.bf16.gmra.mrb[8].mxu1 %v1230_v56  ;;  %v425_v56 = vld [vmem:[%s3586_s8 + $0xe8] sm:$0xff] }
  0xf2   : > { %2454 = vmatprep.mubr.bf16.mxu1 %v1231_v57  ;;  %v442_v57 = vpack.c.bf16 %v425_v56, %v424_v55  ;;  %2483 = vmatpush3.bf16.msra.mxu1 %v2652_v59 }
  0xf3   : > { %2484 = vmatprep.subr.bf16.mxu1 %v2653_v63 }
  0xf6   : > { %615 = vmatmul.mubr.bf16.gmra.mrb[12].mxu0 %v431_v51  ;;  %v423_v51 = vld [vmem:[%s3586_s8 + $0xd8] sm:$0xff]  ;;  %2485 = vmatpush3.bf16.msra.mxu1 %v2653_v63 }
  0xf7   : > { %624 = vmatprep.mubr.bf16.mxu0 %v3305_v0  ;;  %v441_v52 = vpack.c.bf16 %v423_v51, %v422_v50  ;;  %2486 = vmatprep.subr.bf16.mxu1 %v2654_v1 }
  0xf9   : > { %2455 = vmatmul.mubr.bf16.gmra.mrb[12].mxu1 %v1232_v2  ;;  %v2655_v2 = vld [vmem:[#allocation10 + $0x38] sm:$0xff]  }
  0xfa   : > { %2458 = vmatprep.mubr.bf16.mxu1 %v1233_v3  ;;  %2487 = vmatpush3.bf16.msra.mxu1 %v2654_v1  ;;  %v462_v3 = vlaneseq }
  0xfb   : > { %2488 = vmatprep.subr.bf16.mxu1 %v2655_v2 }
  0xfc   : > { %v463_v4 = vshrl.u32 %v462_v3, 7 }
  0xfe   : > { %625 = vmatmul.mubr.bf16.gmra.mrb[16].mxu0 %v432_v60  ;;  %v426_v60 = vld [vmem:[%s3586_s8 + $0xf0] sm:$0xff]  ;;  %2489 = vmatpush3.bf16.msra.mxu1 %v2655_v2  ;;  %v464_v5 = vsub.s32 0, %v463_v4 }
  0xff   : > { %634 = vmatprep.mubr.bf16.mxu0 %v3305_v0  ;;  %v443_v62 = vpack.c.bf16 %v427_v61, %v426_v60 }
 0x101   : > { %2459 = vmatmul.mubr.bf16.gmra.mrb[16].mxu1 %v1234_v11 }
 0x102   : > { %2462 = vmatprep.mubr.bf16.mxu1 %v1235_v12 }
 0x106   : > { %635 = vmatmul.mubr.bf16.gmra.mrb[20].mxu0 %v433_v6  ;;  %v468_v6 = vsub.s32 1, %v463_v4 }
 0x107   : > { %644 = vmatprep.mubr.bf16.mxu0 %v3305_v0 }
 0x109   : > { %2463 = vmatmul.mubr.bf16.gmra.mrb[20].mxu1 %v1236_v20 }
 0x10a   : > { %2466 = vmatprep.mubr.bf16.mxu1 %v1237_v21 }
 0x10e   : > { %645 = vmatmul.mubr.bf16.gmra.mrb[24].mxu0 %v434_v15 }
 0x10f   : > { %654 = vmatprep.mubr.bf16.mxu0 %v3305_v0 }
 0x111   : > { %2467 = vmatmul.mubr.bf16.gmra.mrb[24].mxu1 %v1238_v29 }
 0x112   : > { %2470 = vmatprep.mubr.bf16.mxu1 %v1239_v30 }
 0x116   : > { %655 = vmatmul.mubr.bf16.gmra.mrb[28].mxu0 %v435_v24 }
 0x117   : > { %664 = vmatprep.mubr.bf16.mxu0 %v3305_v0 }
 0x119   : > { %2471 = vmatmul.mubr.bf16.gmra.mrb[28].mxu1 %v1240_v36 }
 0x11e   : > { %665 = vmatmul.mubr.bf16.gmra.mrb[32].mxu0 %v436_v33 }
 0x11f   : > { %674 = vmatprep.mubr.bf16.mxu0 %v3305_v0 }
 0x126   : > { %675 = vmatmul.mubr.bf16.gmra.mrb[36].mxu0 %v437_v39 }
 0x127   : > { %684 = vmatprep.mubr.bf16.mxu0 %v3305_v0 }
 0x12e   : > { %685 = vmatmul.mubr.bf16.gmra.mrb[40].mxu0 %v438_v42 }
 0x12f   : > { %694 = vmatprep.mubr.bf16.mxu0 %v3305_v0 }
 0x136   : > { %695 = vmatmul.mubr.bf16.gmra.mrb[44].mxu0 %v439_v45 }
 0x137   : > { %704 = vmatprep.mubr.bf16.mxu0 %v3305_v0 }
 0x13e   : > { %705 = vmatmul.mubr.bf16.gmra.mrb[48].mxu0 %v440_v48 }
 0x13f   : > { %714 = vmatprep.mubr.bf16.mxu0 %v3305_v0 }
 0x146   : > { %715 = vmatmul.mubr.bf16.gmra.mrb[52].mxu0 %v441_v52 }
 0x147   : > { %724 = vmatprep.mubr.bf16.mxu0 %v3305_v0 }
 0x14e   : > { %725 = vmatmul.mubr.bf16.gmra.mrb[56].mxu0 %v442_v57 }
 0x14f   : > { %734 = vmatprep.mubr.bf16.mxu0 %v3305_v0  ;;  %v460_v0 = vld [vmem:[%s4308_s3] sm:$0x3] }
 0x150   : > { %v3691_v7 = vrot.slane %v460_v0, %v464_v5  ;;  %v3693_v8 = vrot.slane %v460_v0, %v468_v6 }
 0x156   : > { %735 = vmatmul.mubr.bf16.gmra.mrb[60].mxu0 %v443_v62 }
 0x1b1   : > { %v586_v9 = vpop.f32.mrb[0].mxu0 }
 0x1b2   : > { %v3696_v10 = vadd.f32 %v586_v9, %v3691_v7  ;;  %v588_v11 = vpop.f32.mrb[1].mxu0 }
 0x1b3   : > { %v3699_v12 = vadd.f32 %v588_v11, %v3693_v8  ;;  %v590_v13 = vpop.f32.mrb[2].mxu0 }
 0x1b4   : > { %v2254_v14 = vmul.f32 -1.442695, %v3696_v10  ;;  %v3703_v15 = vadd.f32 %v590_v13, %v3691_v7  ;;  %v592_v16 = vpop.f32.mrb[3].mxu0  ;;  %v3721_v29 = vpop.f32.mrb[0].mxu1 }
 0x1b5   : > { %v2255_v17 = vmul.f32 -1.442695, %v3699_v12  ;;  %v3707_v18 = vadd.f32 %v592_v16, %v3693_v8  ;;  %v3727_v32 = vpop.f32.mrb[1].mxu1 }
 0x1b6   : > { %2656 = vpow2.f32 %v2254_v14  ;;  %v2256_v19 = vmul.f32 -1.442695, %v3703_v15  ;;  %v3730_v34 = vpop.f32.mrb[2].mxu1 }
 0x1b7   : > { %2658 = vpow2.f32 %v2255_v17  ;;  %v2257_v20 = vmul.f32 -1.442695, %v3707_v18  ;;  %v3733_v36 = vpop.f32.mrb[3].mxu1 }
 0x1b8   : > { %2660 = vpow2.f32 %v2256_v19 }
 0x1b9   : > { %2662 = vpow2.f32 %v2257_v20  ;;  %v596_v21 = vpop.f32.mrb[4].mxu0 }
 0x1ba   : > { %v3712_v22 = vadd.f32 %v596_v21, %v3691_v7  ;;  %v598_v23 = vpop.f32.mrb[5].mxu0 }
 0x1bb   : > { %v3715_v24 = vadd.f32 %v598_v23, %v3693_v8  ;;  %v600_v25 = vpop.f32.mrb[6].mxu0 }
 0x1bc   : > { %v2258_v26 = vmul.f32 -1.442695, %v3712_v22  ;;  %v3719_v27 = vadd.f32 %v600_v25, %v3691_v7  ;;  %v602_v28 = vpop.f32.mrb[7].mxu0  ;;  %v3745_v53 = vpop.f32.mrb[4].mxu1 }
 0x1bd   : > { %v2259_v30 = vmul.f32 -1.442695, %v3715_v24  ;;  %v3725_v31 = vadd.f32 %v602_v28, %v3693_v8  ;;  %v3751_v56 = vpop.f32.mrb[5].mxu1 }
 0x1be   : > { %2664 = vpow2.f32 %v2258_v26  ;;  %v2260_v33 = vmul.f32 -1.442695, %v3719_v27  ;;  %v3754_v58 = vpop.f32.mrb[6].mxu1 }
 0x1bf   : > { %2666 = vpow2.f32 %v2259_v30  ;;  %v2261_v35 = vmul.f32 -1.442695, %v3725_v31  ;;  %v3757_v60 = vpop.f32.mrb[7].mxu1 }
 0x1c0   : > { %v2657_v37 = vpop.eup %2656  ;;  %2668 = vpow2.f32 %v2260_v33 }
 0x1c1   : > { %v2659_v38 = vpop.eup %2658  ;;  %v937_v39 = vadd.f32 1.0, %v2657_v37  ;;  %2670 = vpow2.f32 %v2261_v35  ;;  %v606_v40 = vpop.f32.mrb[8].mxu0 }
 0x1c2   : > { %v2661_v41 = vpop.eup %2660  ;;  %v938_v42 = vadd.f32 1.0, %v2659_v38  ;;  %v3736_v43 = vadd.f32 %v606_v40, %v3691_v7  ;;  %v608_v44 = vpop.f32.mrb[9].mxu0 }
 0x1c3   : > { %v2663_v45 = vpop.eup %2662  ;;  %2672 = vrcp.f32 %v937_v39  ;;  %v939_v46 = vadd.f32 1.0, %v2661_v41  ;;  %v3739_v47 = vadd.f32 %v608_v44, %v3693_v8  ;;  %v610_v48 = vpop.f32.mrb[10].mxu0 }
 0x1c4   : > { %2674 = vrcp.f32 %v938_v42  ;;  %v940_v49 = vadd.f32 1.0, %v2663_v45  ;;  %v2262_v50 = vmul.f32 -1.442695, %v3736_v43  ;;  %v3743_v51 = vadd.f32 %v610_v48, %v3691_v7  ;;  %v612_v52 = vpop.f32.mrb[11].mxu0  ;;  %v3769_v19 = vpop.f32.mrb[8].mxu1 }
 0x1c5   : > { %2676 = vrcp.f32 %v939_v46  ;;  %v2263_v54 = vmul.f32 -1.442695, %v3739_v47  ;;  %v3749_v55 = vadd.f32 %v612_v52, %v3693_v8  ;;  %v3775_v25 = vpop.f32.mrb[9].mxu1 }
 0x1c6   : > { %2678 = vrcp.f32 %v940_v49  ;;  %v2264_v57 = vmul.f32 -1.442695, %v3743_v51  ;;  %v3779_v33 = vpop.f32.mrb[10].mxu1 }
 0x1c7   : > { %2680 = vpow2.f32 %v2262_v50  ;;  %v2265_v59 = vmul.f32 -1.442695, %v3749_v55  ;;  %v3783_v39 = vpop.f32.mrb[11].mxu1 }
 0x1c8   : > { %v2665_v61 = vpop.eup %2664  ;;  %2682 = vpow2.f32 %v2263_v54 }
 0x1c9   : > { %v2667_v62 = vpop.eup %2666  ;;  %v941_v63 = vadd.f32 1.0, %v2665_v61  ;;  %2684 = vpow2.f32 %v2264_v57  ;;  %v616_v1 = vpop.f32.mrb[12].mxu0 }
 0x1ca   : > { %v2669_v2 = vpop.eup %2668  ;;  %v942_v3 = vadd.f32 1.0, %v2667_v62  ;;  %2686 = vpow2.f32 %v2265_v59  ;;  %v3760_v4 = vadd.f32 %v616_v1, %v3691_v7  ;;  %v618_v5 = vpop.f32.mrb[13].mxu0 }
 0x1cb   : > { %v2671_v0 = vpop.eup %2670  ;;  %2688 = vrcp.f32 %v941_v63  ;;  %v943_v6 = vadd.f32 1.0, %v2669_v2  ;;  %v3763_v9 = vadd.f32 %v618_v5, %v3693_v8  ;;  %v620_v11 = vpop.f32.mrb[14].mxu0 }
 0x1cc   : > { %2690 = vrcp.f32 %v942_v3  ;;  %v944_v13 = vadd.f32 1.0, %v2671_v0  ;;  %v2266_v14 = vmul.f32 -1.442695, %v3760_v4  ;;  %v3767_v16 = vadd.f32 %v620_v11, %v3691_v7  ;;  %v622_v17 = vpop.f32.mrb[15].mxu0  ;;  %v3804_v63 = vpop.f32.mrb[12].mxu1 }
 0x1cd   : > { %v2673_v20 = vpop.eup %2672  ;;  %2692 = vrcp.f32 %v943_v6  ;;  %v2267_v21 = vmul.f32 -1.442695, %v3763_v9  ;;  %v3773_v23 = vadd.f32 %v622_v17, %v3693_v8 }
 0x1ce   : > { %v2675_v26 = vpop.eup %2674  ;;  %v1129_v28 = vmul.f32 %v2673_v20, %v3696_v10  ;;  %2694 = vrcp.f32 %v944_v13  ;;  %v2268_v30 = vmul.f32 -1.442695, %v3767_v16 }
 0x1cf   : > { %v2677_v35 = vpop.eup %2676  ;;  %2696 = vpow2.f32 %v2266_v14  ;;  %v2269_v37 = vmul.f32 -1.442695, %v3773_v23  ;;  %v1130_v38 = vmul.f32 %v2675_v26, %v3699_v12 }
 0x1d0   : > { %v2679_v40 = vpop.eup %2678  ;;  %1498 = vst [vmem:[%s3786_s22] sm:$0xff] %v1129_v28  ;;  %v1131_v10 = vmul.f32 %v2677_v35, %v3703_v15  ;;  %2698 = vpow2.f32 %v2267_v21 }
 0x1d1   : > { %v2681_v41 = vpop.eup %2680  ;;  %2700 = vpow2.f32 %v2268_v30  ;;  %v1466_v42 = vmul.f32 %v3727_v32, %v1130_v38  ;;  %v626_v44 = vpop.f32.mrb[16].mxu0  ;;  %v1132_v45 = vmul.f32 %v2679_v40, %v3707_v18 }
 0x1d2   : > { %v2683_v46 = vpop.eup %2682  ;;  %1499 = vst [vmem:[%s3786_s22 + $0x8] sm:$0xff] %v1131_v10  ;;  %v945_v12 = vadd.f32 1.0, %v2681_v41  ;;  %2702 = vpow2.f32 %v2269_v37  ;;  %v3794_v48 = vadd.f32 %v626_v44, %v3691_v7  ;;  %v628_v49 = vpop.f32.mrb[17].mxu0 }
 0x1d3   : > { %v2685_v50 = vpop.eup %2684  ;;  %v946_v52 = vadd.f32 1.0, %v2683_v46  ;;  %v3797_v15 = vadd.f32 %v628_v49, %v3693_v8  ;;  %v1467_v54 = vmul.f32 %v3733_v36, %v1132_v45  ;;  %v630_v57 = vpop.f32.mrb[18].mxu0 }
 0x1d4   : > { %v2687_v32 = vpop.eup %2686  ;;  %2704 = vrcp.f32 %v945_v12  ;;  %v947_v59 = vadd.f32 1.0, %v2685_v50  ;;  %v2270_v18 = vmul.f32 -1.442695, %v3794_v48  ;;  %v3802_v61 = vadd.f32 %v630_v57, %v3691_v7  ;;  %v632_v62 = vpop.f32.mrb[19].mxu0 }
 0x1d5   : > { %v2689_v1 = vpop.eup %2688  ;;  %2706 = vrcp.f32 %v946_v52  ;;  %v948_v2 = vadd.f32 1.0, %v2687_v32  ;;  %v2271_v3 = vmul.f32 -1.442695, %v3797_v15  ;;  %v1530_v5 = vpack.c.bf16 %v1467_v54, %v1466_v42  ;;  %v3807_v36 = vpop.f32.mrb[13].mxu1 }
 0x1d6   : > { %v2691_v0 = vpop.eup %2690  ;;  %v1133_v6 = vmul.f32 %v2689_v1, %v3712_v22  ;;  %2708 = vrcp.f32 %v947_v59  ;;  %v2272_v11 = vmul.f32 -1.442695, %v3802_v61  ;;  %v3812_v13 = vadd.f32 %v632_v62, %v3693_v8  ;;  %v3814_v14 = vpop.f32.mrb[14].mxu1 }
 0x1d7   : > { %v2693_v17 = vpop.eup %2692  ;;  %2710 = vrcp.f32 %v948_v2  ;;  %v1134_v20 = vmul.f32 %v2691_v0, %v3715_v24  ;;  %2490 = vmatprep.mubr.bf16.mxu1 %v1530_v5  ;;  %v3817_v21 = vpop.f32.mrb[15].mxu1 }
 0x1d8   : > { %v2695_v26 = vpop.eup %2694  ;;  %1500 = vst [vmem:[%s3786_s22 + $0x10] sm:$0xff] %v1133_v6  ;;  %v1135_v22 = vmul.f32 %v2693_v17, %v3719_v27  ;;  %2712 = vpow2.f32 %v2270_v18  ;;  %v2273_v28 = vmul.f32 -1.442695, %v3812_v13  ;;  %v3836_v52 = vpop.f32.mrb[16].mxu1 }
 0x1d9   : > { %v2697_v30 = vpop.eup %2696  ;;  %v1468_v35 = vmul.f32 %v3721_v29, %v1134_v20  ;;  %v1136_v37 = vmul.f32 %v2695_v26, %v3725_v31  ;;  %2714 = vpow2.f32 %v2271_v3  ;;  %v636_v38 = vpop.f32.mrb[20].mxu0 }
 0x1da   : > { %v2699_v40 = vpop.eup %2698  ;;  %1501 = vst [vmem:[%s3786_s22 + $0x18] sm:$0xff] %v1135_v22  ;;  %v949_v24 = vadd.f32 1.0, %v2697_v30  ;;  %2716 = vpow2.f32 %v2272_v11  ;;  %v3826_v10 = vadd.f32 %v636_v38, %v3691_v7  ;;  %v638_v41 = vpop.f32.mrb[21].mxu0 }
 0x1db   : > { %v2701_v42 = vpop.eup %2700  ;;  %v950_v27 = vadd.f32 1.0, %v2699_v40  ;;  %v1469_v44 = vmul.f32 %v3730_v34, %v1136_v37  ;;  %2718 = vpow2.f32 %v2273_v28  ;;  %v3830_v45 = vadd.f32 %v638_v41, %v3693_v8  ;;  %v640_v29 = vpop.f32.mrb[22].mxu0 }
 0x1dc   : > { %v2703_v31 = vpop.eup %2702  ;;  %2720 = vrcp.f32 %v949_v24  ;;  %v951_v46 = vadd.f32 1.0, %v2701_v42  ;;  %v2274_v12 = vmul.f32 -1.442695, %v3826_v10  ;;  %v3834_v49 = vadd.f32 %v640_v29, %v3691_v7  ;;  %v642_v50 = vpop.f32.mrb[23].mxu0 }
 0x1dd   : > { %2722 = vrcp.f32 %v950_v27  ;;  %v952_v54 = vadd.f32 1.0, %v2703_v31  ;;  %v1531_v57 = vpack.c.bf16 %v1469_v44, %v1468_v35  ;;  %v2275_v34 = vmul.f32 -1.442695, %v3830_v45  ;;  %v3839_v32 = vpop.f32.mrb[17].mxu1 }
 0x1de   : > { %v2705_v59 = vpop.eup %2704  ;;  %2724 = vrcp.f32 %v951_v46  ;;  %v2276_v18 = vmul.f32 -1.442695, %v3834_v49  ;;  %v3843_v62 = vadd.f32 %v642_v50, %v3693_v8  ;;  %v3845_v1 = vpop.f32.mrb[18].mxu1 }
 0x1df   : > { %v2707_v2 = vpop.eup %2706  ;;  %v1137_v3 = vmul.f32 %v2705_v59, %v3736_v43  ;;  %2726 = vrcp.f32 %v952_v54  ;;  %2491 = vmatmul.mubr.bf16.vlgmr.msra.gmra.mrb[32].mxu1 %v1531_v57  ;;  %v3848_v5 = vpop.f32.mrb[19].mxu1 }
 0x1e0   : > { %v2709_v0 = vpop.eup %2708  ;;  %2728 = vpow2.f32 %v2274_v12  ;;  %v2277_v6 = vmul.f32 -1.442695, %v3843_v62  ;;  %v1138_v11 = vmul.f32 %v2707_v2, %v3739_v47  ;;  %v3867_v27 = vpop.f32.mrb[20].mxu1 }
 0x1e1   : > { %v2711_v17 = vpop.eup %2710  ;;  %1502 = vst [vmem:[%s3786_s22 + $0x20] sm:$0xff] %v1137_v3  ;;  %v1139_v20 = vmul.f32 %v2709_v0, %v3743_v51  ;;  %2730 = vpow2.f32 %v2275_v34  ;;  %v646_v26 = vpop.f32.mrb[24].mxu0 }
 0x1e2   : > { %v2713_v22 = vpop.eup %2712  ;;  %2732 = vpow2.f32 %v2276_v18  ;;  %v1470_v43 = vmul.f32 %v3751_v56, %v1138_v11  ;;  %v3856_v28 = vadd.f32 %v646_v26, %v3691_v7  ;;  %v648_v30 = vpop.f32.mrb[25].mxu0  ;;  %v1140_v35 = vmul.f32 %v2711_v17, %v3749_v55 }
 0x1e3   : > { %v2715_v37 = vpop.eup %2714  ;;  %1503 = vst [vmem:[%s3786_s22 + $0x28] sm:$0xff] %v1139_v20  ;;  %v953_v38 = vadd.f32 1.0, %v2713_v22  ;;  %2734 = vpow2.f32 %v2277_v6  ;;  %v3861_v47 = vadd.f32 %v648_v30, %v3693_v8  ;;  %v650_v51 = vpop.f32.mrb[26].mxu0 }
 0x1e4   : > { %v2717_v40 = vpop.eup %2716  ;;  %v954_v24 = vadd.f32 1.0, %v2715_v37  ;;  %v1471_v41 = vmul.f32 %v3757_v60, %v1140_v35  ;;  %v3865_v56 = vadd.f32 %v650_v51, %v3691_v7  ;;  %v652_v42 = vpop.f32.mrb[27].mxu0  ;;  %v2278_v29 = vmul.f32 -1.442695, %v3856_v28 }
 0x1e5   : > { %v2719_v44 = vpop.eup %2718  ;;  %2736 = vrcp.f32 %v953_v38  ;;  %v955_v55 = vadd.f32 1.0, %v2717_v40  ;;  %v3871_v31 = vadd.f32 %v652_v42, %v3693_v8  ;;  %v3873_v46 = vpop.f32.mrb[21].mxu1  ;;  %v2279_v50 = vmul.f32 -1.442695, %v3861_v47 }
 0x1e6   : > { %v2721_v12 = vpop.eup %2720  ;;  %2738 = vrcp.f32 %v954_v24  ;;  %v956_v60 = vadd.f32 1.0, %v2719_v44  ;;  %v1532_v54 = vpack.c.bf16 %v1471_v41, %v1470_v43  ;;  %v3876_v57 = vpop.f32.mrb[22].mxu1  ;;  %v2280_v18 = vmul.f32 -1.442695, %v3865_v56 }
 0x1e7   : > { %v2723_v34 = vpop.eup %2722  ;;  %v1141_v59 = vmul.f32 %v2721_v12, %v3760_v4  ;;  %2740 = vrcp.f32 %v955_v55  ;;  %v3880_v2 = vpop.f32.mrb[23].mxu1  ;;  %v2281_v6 = vmul.f32 -1.442695, %v3871_v31 }
 0x1e8   : > { %v2725_v3 = vpop.eup %2724  ;;  %2742 = vrcp.f32 %v956_v60  ;;  %v1142_v0 = vmul.f32 %v2723_v34, %v3763_v9  ;;  %2494 = vmatprep.mubr.bf16.mxu1 %v1532_v54  ;;  %v3897_v24 = vpop.f32.mrb[24].mxu1 }
 0x1e9   : > { %v2727_v11 = vpop.eup %2726  ;;  %1504 = vst [vmem:[%s3786_s22 + $0x30] sm:$0xff] %v1141_v59  ;;  %v1143_v17 = vmul.f32 %v2725_v3, %v3767_v16  ;;  %2744 = vpow2.f32 %v2278_v29  ;;  %v656_v20 = vpop.f32.mrb[28].mxu0 }
 0x1ea   : > { %v2729_v4 = vpop.eup %2728  ;;  %v1472_v26 = vmul.f32 %v3745_v53, %v1142_v0  ;;  %v1144_v22 = vmul.f32 %v2727_v11, %v3773_v23  ;;  %2746 = vpow2.f32 %v2279_v50  ;;  %v3889_v43 = vadd.f32 %v656_v20, %v3691_v7  ;;  %v658_v30 = vpop.f32.mrb[29].mxu0 }
 0x1eb   : > { %v2731_v9 = vpop.eup %2730  ;;  %1505 = vst [vmem:[%s3786_s22 + $0x38] sm:$0xff] %v1143_v17  ;;  %v957_v35 = vadd.f32 1.0, %v2729_v4  ;;  %2748 = vpow2.f32 %v2280_v18  ;;  %v3893_v37 = vadd.f32 %v658_v30, %v3693_v8  ;;  %v660_v16 = vpop.f32.mrb[30].mxu0 }
 0x1ec   : > { %v2733_v38 = vpop.eup %2732  ;;  %v958_v51 = vadd.f32 1.0, %v2731_v9  ;;  %v1473_v40 = vmul.f32 %v3754_v58, %v1144_v22  ;;  %2750 = vpow2.f32 %v2281_v6  ;;  %v2282_v53 = vmul.f32 -1.442695, %v3889_v43  ;;  %v662_v23 = vpop.f32.mrb[31].mxu0 }
 0x1ed   : > { %v2735_v41 = vpop.eup %2734  ;;  %2752 = vrcp.f32 %v957_v35  ;;  %v959_v42 = vadd.f32 1.0, %v2733_v38  ;;  %v2283_v44 = vmul.f32 -1.442695, %v3893_v37  ;;  %v3901_v55 = vadd.f32 %v660_v16, %v3691_v7  ;;  %v3903_v29 = vpop.f32.mrb[25].mxu1 }
 0x1ee   : > { %2754 = vrcp.f32 %v958_v51  ;;  %v960_v12 = vadd.f32 1.0, %v2735_v41  ;;  %v1533_v60 = vpack.c.bf16 %v1473_v40, %v1472_v26  ;;  %v3906_v58 = vadd.f32 %v662_v23, %v3693_v8  ;;  %v3908_v50 = vpop.f32.mrb[26].mxu1 }
 0x1ef   : > { %v2737_v54 = vpop.eup %2736  ;;  %2756 = vrcp.f32 %v959_v42  ;;  %v2284_v34 = vmul.f32 -1.442695, %v3901_v55  ;;  %v3911_v59 = vpop.f32.mrb[27].mxu1 }
 0x1f0   : > { %v2739_v18 = vpop.eup %2738  ;;  %v1145_v3 = vmul.f32 %v2737_v54, %v3794_v48  ;;  %2758 = vrcp.f32 %v960_v12  ;;  %v2285_v0 = vmul.f32 -1.442695, %v3906_v58  ;;  %2495 = vmatmul.mubr.bf16.gmra.mrb[36].mxu1 %v1533_v60  ;;  %v3930_v40 = vpop.f32.mrb[28].mxu1 }
 0x1f1   : > { %v2741_v6 = vpop.eup %2740  ;;  %2760 = vpow2.f32 %v2282_v53  ;;  %v1146_v11 = vmul.f32 %v2739_v18, %v3797_v15  ;;  %v666_v17 = vpop.f32.mrb[32].mxu0 }
 0x1f2   : > { %v2743_v20 = vpop.eup %2742  ;;  %1506 = vst [vmem:[%s3786_s22 + $0x40] sm:$0xff] %v1145_v3  ;;  %v1147_v4 = vmul.f32 %v2741_v6, %v3802_v61  ;;  %2762 = vpow2.f32 %v2283_v44  ;;  %v3919_v26 = vadd.f32 %v666_v17, %v3691_v7  ;;  %v668_v22 = vpop.f32.mrb[33].mxu0 }
 0x1f3   : > { %v2745_v48 = vpop.eup %2744  ;;  %2764 = vpow2.f32 %v2284_v34  ;;  %v1474_v30 = vmul.f32 %v3775_v25, %v1146_v11  ;;  %v3923_v9 = vadd.f32 %v668_v22, %v3693_v8  ;;  %v1148_v35 = vmul.f32 %v2743_v20, %v3812_v13  ;;  %v670_v15 = vpop.f32.mrb[34].mxu0 }
 0x1f4   : > { %v2747_v16 = vpop.eup %2746  ;;  %1507 = vst [vmem:[%s3786_s22 + $0x48] sm:$0xff] %v1147_v4  ;;  %v961_v38 = vadd.f32 1.0, %v2745_v48  ;;  %2766 = vpow2.f32 %v2285_v0  ;;  %v3928_v61 = vadd.f32 %v670_v15, %v3691_v7  ;;  %v672_v51 = vpop.f32.mrb[35].mxu0  ;;  %v2286_v12 = vmul.f32 -1.442695, %v3919_v26 }
 0x1f5   : > { %v2749_v53 = vpop.eup %2748  ;;  %v962_v23 = vadd.f32 1.0, %v2747_v16  ;;  %v1475_v25 = vmul.f32 %v3783_v39, %v1148_v35  ;;  %v3934_v41 = vadd.f32 %v672_v51, %v3693_v8  ;;  %v3936_v42 = vpop.f32.mrb[29].mxu1  ;;  %v2287_v18 = vmul.f32 -1.442695, %v3923_v9 }
 0x1f6   : > { %v2751_v13 = vpop.eup %2750  ;;  %2768 = vrcp.f32 %v961_v38  ;;  %v963_v44 = vadd.f32 1.0, %v2749_v53  ;;  %v3939_v60 = vpop.f32.mrb[30].mxu1  ;;  %v2288_v11 = vmul.f32 -1.442695, %v3928_v61 }
 0x1f7   : > { %v2753_v54 = vpop.eup %2752  ;;  %2770 = vrcp.f32 %v962_v23  ;;  %v964_v34 = vadd.f32 1.0, %v2751_v13  ;;  %v1534_v3 = vpack.c.bf16 %v1475_v25, %v1474_v30  ;;  %v3942_v39 = vpop.f32.mrb[31].mxu1  ;;  %v2289_v4 = vmul.f32 -1.442695, %v3934_v41 }
 0x1f8   : > { %v2755_v0 = vpop.eup %2754  ;;  %v1149_v6 = vmul.f32 %v2753_v54, %v3826_v10  ;;  %2772 = vrcp.f32 %v963_v44 }
 0x1f9   : > { %v2757_v17 = vpop.eup %2756  ;;  %2774 = vrcp.f32 %v964_v34  ;;  %v1150_v20 = vmul.f32 %v2755_v0, %v3830_v45  ;;  %2498 = vmatprep.mubr.bf16.mxu1 %v1534_v3  ;;  %v676_v22 = vpop.f32.mrb[36].mxu0 }
 0x1fa   : > { %v2759_v48 = vpop.eup %2758  ;;  %1508 = vst [vmem:[%s3786_s22 + $0x50] sm:$0xff] %v1149_v6  ;;  %v1151_v30 = vmul.f32 %v2757_v17, %v3834_v49  ;;  %2776 = vpow2.f32 %v2286_v12  ;;  %v3951_v35 = vadd.f32 %v676_v22, %v3691_v7  ;;  %v678_v10 = vpop.f32.mrb[37].mxu0 }
 0x1fb   : > { %v2761_v15 = vpop.eup %2760  ;;  %v1476_v16 = vmul.f32 %v3769_v19, %v1150_v20  ;;  %v1152_v38 = vmul.f32 %v2759_v48, %v3843_v62  ;;  %2778 = vpow2.f32 %v2287_v18  ;;  %v3956_v45 = vadd.f32 %v678_v10, %v3693_v8  ;;  %v680_v51 = vpop.f32.mrb[38].mxu0 }
 0x1fc   : > { %v2763_v53 = vpop.eup %2762  ;;  %1509 = vst [vmem:[%s3786_s22 + $0x58] sm:$0xff] %v1151_v30  ;;  %v965_v23 = vadd.f32 1.0, %v2761_v15  ;;  %2780 = vpow2.f32 %v2288_v11  ;;  %v3960_v49 = vadd.f32 %v680_v51, %v3691_v7  ;;  %v682_v25 = vpop.f32.mrb[39].mxu0  ;;  %v2290_v54 = vmul.f32 -1.442695, %v3951_v35 }
 0x1fd   : > { %v2765_v13 = vpop.eup %2764  ;;  %v966_v44 = vadd.f32 1.0, %v2763_v53  ;;  %v1477_v12 = vmul.f32 %v3779_v33, %v1152_v38  ;;  %2782 = vpow2.f32 %v2289_v4  ;;  %v3965_v34 = vadd.f32 %v682_v25, %v3693_v8 }
 0x1fe   : > { %v2767_v19 = vpop.eup %2766  ;;  %2784 = vrcp.f32 %v965_v23  ;;  %v967_v62 = vadd.f32 1.0, %v2765_v13  ;;  %v2291_v0 = vmul.f32 -1.442695, %v3956_v45  ;;  %v2292_v11 = vmul.f32 -1.442695, %v3960_v49 }
 0x1ff   : > { %2786 = vrcp.f32 %v966_v44  ;;  %v968_v18 = vadd.f32 1.0, %v2767_v19  ;;  %v1535_v3 = vpack.c.bf16 %v1477_v12, %v1476_v16  ;;  %v2293_v20 = vmul.f32 -1.442695, %v3965_v34 }
 0x200   : > { %v2769_v6 = vpop.eup %2768  ;;  %2788 = vrcp.f32 %v967_v62 }
 0x201   : > { %v2771_v33 = vpop.eup %2770  ;;  %v1153_v17 = vmul.f32 %v2769_v6, %v3856_v28  ;;  %2790 = vrcp.f32 %v968_v18  ;;  %2499 = vmatmul.mubr.bf16.gmra.mrb[40].mxu1 %v1535_v3  ;;  %v686_v4 = vpop.f32.mrb[40].mxu0 }
 0x202   : > { %v2773_v22 = vpop.eup %2772  ;;  %2792 = vpow2.f32 %v2290_v54  ;;  %v1154_v48 = vmul.f32 %v2771_v33, %v3861_v47  ;;  %v3973_v30 = vadd.f32 %v686_v4, %v3691_v7  ;;  %v688_v10 = vpop.f32.mrb[41].mxu0 }
 0x203   : > { %v2775_v15 = vpop.eup %2774  ;;  %1510 = vst [vmem:[%s3786_s22 + $0x60] sm:$0xff] %v1153_v17  ;;  %v1155_v16 = vmul.f32 %v2773_v22, %v3865_v56  ;;  %2794 = vpow2.f32 %v2291_v0  ;;  %v3978_v28 = vadd.f32 %v688_v10, %v3693_v8  ;;  %v690_v38 = vpop.f32.mrb[42].mxu0 }
 0x204   : > { %v2777_v51 = vpop.eup %2776  ;;  %2796 = vpow2.f32 %v2292_v11  ;;  %v1478_v53 = vmul.f32 %v3807_v36, %v1154_v48  ;;  %v2294_v47 = vmul.f32 -1.442695, %v3973_v30  ;;  %v1156_v23 = vmul.f32 %v2775_v15, %v3871_v31  ;;  %v692_v25 = vpop.f32.mrb[43].mxu0 }
 0x205   : > { %v2779_v13 = vpop.eup %2778  ;;  %1511 = vst [vmem:[%s3786_s22 + $0x68] sm:$0xff] %v1155_v16  ;;  %v969_v44 = vadd.f32 1.0, %v2777_v51  ;;  %2798 = vpow2.f32 %v2293_v20  ;;  %v3985_v56 = vadd.f32 %v690_v38, %v3691_v7  ;;  %v3989_v54 = vadd.f32 %v692_v25, %v3693_v8 }
 0x206   : > { %v2781_v12 = vpop.eup %2780  ;;  %v970_v19 = vadd.f32 1.0, %v2779_v13  ;;  %2800 = vpow2.f32 %v2294_v47  ;;  %v1479_v62 = vmul.f32 %v3817_v21, %v1156_v23  ;;  %v2295_v31 = vmul.f32 -1.442695, %v3978_v28 }
 0x207   : > { %v2783_v36 = vpop.eup %2782  ;;  %2802 = vrcp.f32 %v969_v44  ;;  %v971_v18 = vadd.f32 1.0, %v2781_v12  ;;  %v2296_v11 = vmul.f32 -1.442695, %v3985_v56  ;;  %v2297_v21 = vmul.f32 -1.442695, %v3989_v54 }
 0x208   : > { %v2785_v3 = vpop.eup %2784  ;;  %2804 = vrcp.f32 %v970_v19  ;;  %v972_v0 = vadd.f32 1.0, %v2783_v36  ;;  %v1536_v6 = vpack.c.bf16 %v1479_v62, %v1478_v53 }
 0x209   : > { %v2787_v33 = vpop.eup %2786  ;;  %v1157_v17 = vmul.f32 %v2785_v3, %v3889_v43  ;;  %2806 = vrcp.f32 %v971_v18  ;;  %v696_v20 = vpop.f32.mrb[44].mxu0 }
 0x20a   : > { %v2789_v4 = vpop.eup %2788  ;;  %2808 = vrcp.f32 %v972_v0  ;;  %v1158_v22 = vmul.f32 %v2787_v33, %v3893_v37  ;;  %2502 = vmatprep.mubr.bf16.mxu1 %v1536_v6  ;;  %v3997_v48 = vadd.f32 %v696_v20, %v3691_v7  ;;  %v698_v10 = vpop.f32.mrb[45].mxu0 }
 0x20b   : > { %v2791_v15 = vpop.eup %2790  ;;  %1512 = vst [vmem:[%s3786_s22 + $0x70] sm:$0xff] %v1157_v17  ;;  %v1159_v16 = vmul.f32 %v2789_v4, %v3901_v55  ;;  %2810 = vpow2.f32 %v2295_v31  ;;  %v4002_v43 = vadd.f32 %v698_v10, %v3693_v8  ;;  %v700_v38 = vpop.f32.mrb[46].mxu0 }
 0x20c   : > { %v2793_v51 = vpop.eup %2792  ;;  %v1480_v53 = vmul.f32 %v3804_v63, %v1158_v22  ;;  %v1160_v37 = vmul.f32 %v2791_v15, %v3906_v58  ;;  %2812 = vpow2.f32 %v2296_v11  ;;  %v2298_v47 = vmul.f32 -1.442695, %v3997_v48  ;;  %v702_v23 = vpop.f32.mrb[47].mxu0 }
 0x20d   : > { %v2795_v25 = vpop.eup %2794  ;;  %1513 = vst [vmem:[%s3786_s22 + $0x78] sm:$0xff] %v1159_v16  ;;  %v973_v13 = vadd.f32 1.0, %v2793_v51  ;;  %2814 = vpow2.f32 %v2297_v21  ;;  %v4009_v55 = vadd.f32 %v700_v38, %v3691_v7  ;;  %v4013_v63 = vadd.f32 %v702_v23, %v3693_v8 }
 0x20e   : > { %v2797_v44 = vpop.eup %2796  ;;  %v974_v12 = vadd.f32 1.0, %v2795_v25  ;;  %v1481_v19 = vmul.f32 %v3814_v14, %v1160_v37  ;;  %2816 = vpow2.f32 %v2298_v47  ;;  %v2299_v3 = vmul.f32 -1.442695, %v4002_v43 }
 0x20f   : > { %v2799_v58 = vpop.eup %2798  ;;  %2818 = vrcp.f32 %v973_v13  ;;  %v975_v62 = vadd.f32 1.0, %v2797_v44  ;;  %v2300_v11 = vmul.f32 -1.442695, %v4009_v55  ;;  %v2301_v21 = vmul.f32 -1.442695, %v4013_v63 }
 0x210   : > { %v2801_v36 = vpop.eup %2800  ;;  %2820 = vrcp.f32 %v974_v12  ;;  %v976_v18 = vadd.f32 1.0, %v2799_v58  ;;  %v1537_v31 = vpack.c.bf16 %v1481_v19, %v1480_v53 }
 0x211   : > { %v2803_v0 = vpop.eup %2802  ;;  %2822 = vrcp.f32 %v975_v62  ;;  %v977_v6 = vadd.f32 1.0, %v2801_v36  ;;  %v706_v14 = vpop.f32.mrb[48].mxu0 }
 0x212   : > { %v2805_v33 = vpop.eup %2804  ;;  %v1161_v17 = vmul.f32 %v2803_v0, %v3919_v26  ;;  %2824 = vrcp.f32 %v976_v18  ;;  %2503 = vmatmul.mubr.bf16.gmra.mrb[44].mxu1 %v1537_v31  ;;  %v4020_v20 = vadd.f32 %v706_v14, %v3691_v7  ;;  %v708_v4 = vpop.f32.mrb[49].mxu0 }
 0x213   : > { %v2807_v22 = vpop.eup %2806  ;;  %2826 = vrcp.f32 %v977_v6  ;;  %v1162_v10 = vmul.f32 %v2805_v33, %v3923_v9  ;;  %v710_v15 = vpop.f32.mrb[50].mxu0  ;;  %v4027_v51 = vadd.f32 %v708_v4, %v3693_v8 }
 0x214   : > { %v2809_v16 = vpop.eup %2808  ;;  %1514 = vst [vmem:[%s3786_s22 + $0x80] sm:$0xff] %v1161_v17  ;;  %v1163_v38 = vmul.f32 %v2807_v22, %v3928_v61  ;;  %2828 = vpow2.f32 %v2299_v3  ;;  %v2302_v26 = vmul.f32 -1.442695, %v4020_v20  ;;  %v712_v53 = vpop.f32.mrb[51].mxu0  ;;  %v4032_v9 = vadd.f32 %v710_v15, %v3691_v7 }
 0x215   : > { %v2811_v37 = vpop.eup %2810  ;;  %2830 = vpow2.f32 %v2300_v11  ;;  %v1482_v47 = vmul.f32 %v3839_v32, %v1162_v10  ;;  %v1164_v23 = vmul.f32 %v2809_v16, %v3934_v41  ;;  %v4036_v61 = vadd.f32 %v712_v53, %v3693_v8 }
 0x216   : > { %v2813_v25 = vpop.eup %2812  ;;  %1515 = vst [vmem:[%s3786_s22 + $0x88] sm:$0xff] %v1163_v38  ;;  %v978_v13 = vadd.f32 1.0, %v2811_v37  ;;  %2832 = vpow2.f32 %v2301_v21  ;;  %v2303_v41 = vmul.f32 -1.442695, %v4027_v51  ;;  %v2304_v31 = vmul.f32 -1.442695, %v4032_v9 }
 0x217   : > { %v2815_v44 = vpop.eup %2814  ;;  %v979_v12 = vadd.f32 1.0, %v2813_v25  ;;  %2834 = vpow2.f32 %v2302_v26  ;;  %v1483_v19 = vmul.f32 %v3848_v5, %v1164_v23  ;;  %v2305_v11 = vmul.f32 -1.442695, %v4036_v61 }
 0x218   : > { %v2817_v58 = vpop.eup %2816  ;;  %2836 = vrcp.f32 %v978_v13  ;;  %v980_v32 = vadd.f32 1.0, %v2815_v44 }
 0x219   : > { %v2819_v62 = vpop.eup %2818  ;;  %2838 = vrcp.f32 %v979_v12  ;;  %v981_v36 = vadd.f32 1.0, %v2817_v58  ;;  %v1538_v18 = vpack.c.bf16 %v1483_v19, %v1482_v47  ;;  %v716_v3 = vpop.f32.mrb[52].mxu0 }
 0x21a   : > { %v2821_v0 = vpop.eup %2820  ;;  %v1165_v6 = vmul.f32 %v2819_v62, %v3951_v35  ;;  %2840 = vrcp.f32 %v980_v32  ;;  %v4044_v5 = vadd.f32 %v716_v3, %v3691_v7  ;;  %v718_v14 = vpop.f32.mrb[53].mxu0 }
 0x21b   : > { %v2823_v33 = vpop.eup %2822  ;;  %2842 = vrcp.f32 %v981_v36  ;;  %v1166_v17 = vmul.f32 %v2821_v0, %v3956_v45  ;;  %2506 = vmatprep.mubr.bf16.mxu1 %v1538_v18  ;;  %v4048_v21 = vadd.f32 %v718_v14, %v3693_v8  ;;  %v720_v4 = vpop.f32.mrb[54].mxu0 }
 0x21c   : > { %v2825_v22 = vpop.eup %2824  ;;  %1516 = vst [vmem:[%s3786_s22 + $0x90] sm:$0xff] %v1165_v6  ;;  %v1167_v35 = vmul.f32 %v2823_v33, %v3960_v49  ;;  %2844 = vpow2.f32 %v2303_v41  ;;  %v2306_v10 = vmul.f32 -1.442695, %v4044_v5  ;;  %v4054_v15 = vadd.f32 %v720_v4, %v3691_v7  ;;  %v722_v16 = vpop.f32.mrb[55].mxu0 }
 0x21d   : > { %v2827_v38 = vpop.eup %2826  ;;  %v1484_v45 = vmul.f32 %v3836_v52, %v1166_v17  ;;  %v1168_v26 = vmul.f32 %v2825_v22, %v3965_v34  ;;  %2846 = vpow2.f32 %v2304_v31  ;;  %v2307_v53 = vmul.f32 -1.442695, %v4048_v21 }
 0x21e   : > { %v2829_v37 = vpop.eup %2828  ;;  %1517 = vst [vmem:[%s3786_s22 + $0x98] sm:$0xff] %v1167_v35  ;;  %v1169_v49 = vmul.f32 %v2827_v38, %v3973_v30  ;;  %2848 = vpow2.f32 %v2305_v11  ;;  %v4062_v47 = vadd.f32 %v722_v16, %v3693_v8  ;;  %v2308_v58 = vmul.f32 -1.442695, %v4054_v15 }
 0x21f   : > { %v2831_v23 = vpop.eup %2830  ;;  %v982_v25 = vadd.f32 1.0, %v2829_v37  ;;  %v1485_v13 = vmul.f32 %v3845_v1, %v1168_v26  ;;  %2850 = vpow2.f32 %v2306_v10 }
 0x220   : > { %v2833_v44 = vpop.eup %2832  ;;  %1518 = vst [vmem:[%s3786_s22 + $0xa0] sm:$0xff] %v1169_v49  ;;  %v983_v52 = vadd.f32 1.0, %v2831_v23  ;;  %2852 = vpow2.f32 %v2307_v53  ;;  %v2309_v62 = vmul.f32 -1.442695, %v4062_v47 }
 0x221   : > { %v2835_v34 = vpop.eup %2834  ;;  %2854 = vrcp.f32 %v982_v25  ;;  %v984_v12 = vadd.f32 1.0, %v2833_v44  ;;  %v1539_v19 = vpack.c.bf16 %v1485_v13, %v1484_v45  ;;  %v726_v30 = vpop.f32.mrb[56].mxu0 }
 0x222   : > { %v2837_v32 = vpop.eup %2836  ;;  %2856 = vrcp.f32 %v983_v52  ;;  %v985_v41 = vadd.f32 1.0, %v2835_v34  ;;  %v4069_v36 = vadd.f32 %v726_v30, %v3691_v7  ;;  %v728_v1 = vpop.f32.mrb[57].mxu0 }
 0x223   : > { %v2839_v18 = vpop.eup %2838  ;;  %2858 = vrcp.f32 %v984_v12  ;;  %2507 = vmatmul.mubr.bf16.gmra.mrb[48].mxu1 %v1539_v19  ;;  %v1170_v31 = vmul.f32 %v2837_v32, %v3978_v28  ;;  %v4073_v3 = vadd.f32 %v728_v1, %v3693_v8  ;;  %v730_v0 = vpop.f32.mrb[58].mxu0 }
 0x224   : > { %v2841_v6 = vpop.eup %2840  ;;  %v1171_v11 = vmul.f32 %v2839_v18, %v3985_v56  ;;  %2860 = vrcp.f32 %v985_v41  ;;  %v2310_v14 = vmul.f32 -1.442695, %v4069_v36  ;;  %v732_v33 = vpop.f32.mrb[59].mxu0  ;;  %v4083_v56 = vadd.f32 %v730_v0, %v3691_v7 }
 0x225   : > { %v2843_v17 = vpop.eup %2842  ;;  %2862 = vpow2.f32 %v2308_v58  ;;  %v1486_v4 = vmul.f32 %v3873_v46, %v1170_v31  ;;  %v2311_v22 = vmul.f32 -1.442695, %v4073_v3  ;;  %v1172_v28 = vmul.f32 %v2841_v6, %v3989_v54 }
 0x226   : > { %v2845_v35 = vpop.eup %2844  ;;  %1519 = vst [vmem:[%s3786_s22 + $0xa8] sm:$0xff] %v1171_v11  ;;  %v1173_v10 = vmul.f32 %v2843_v17, %v3997_v48  ;;  %2864 = vpow2.f32 %v2309_v62  ;;  %v4087_v26 = vadd.f32 %v732_v33, %v3693_v8  ;;  %v2312_v13 = vmul.f32 -1.442695, %v4083_v56 }
 0x227   : > { %v2847_v16 = vpop.eup %2846  ;;  %v986_v38 = vadd.f32 1.0, %v2845_v35  ;;  %2866 = vpow2.f32 %v2310_v14  ;;  %v1487_v45 = vmul.f32 %v3880_v2, %v1172_v28 }
 0x228   : > { %v2849_v46 = vpop.eup %2848  ;;  %1520 = vst [vmem:[%s3786_s22 + $0xb0] sm:$0xff] %v1173_v10  ;;  %v987_v53 = vadd.f32 1.0, %v2847_v16  ;;  %2868 = vpow2.f32 %v2311_v22  ;;  %v2313_v12 = vmul.f32 -1.442695, %v4087_v26 }
 0x229   : > { %v2851_v54 = vpop.eup %2850  ;;  %2870 = vrcp.f32 %v986_v38  ;;  %v988_v37 = vadd.f32 1.0, %v2849_v46  ;;  %v1540_v48 = vpack.c.bf16 %v1487_v45, %v1486_v4  ;;  %v736_v49 = vpop.f32.mrb[60].mxu0 }
 0x22a   : > { %v2853_v23 = vpop.eup %2852  ;;  %2872 = vrcp.f32 %v987_v53  ;;  %v989_v25 = vadd.f32 1.0, %v2851_v54  ;;  %v4092_v44 = vadd.f32 %v736_v49, %v3691_v7  ;;  %v738_v2 = vpop.f32.mrb[61].mxu0 }
 0x22b   : > { %v2855_v52 = vpop.eup %2854  ;;  %2874 = vrcp.f32 %v988_v37  ;;  %v990_v34 = vadd.f32 1.0, %v2853_v23  ;;  %2510 = vmatprep.mubr.bf16.mxu1 %v1540_v48  ;;  %v4096_v19 = vadd.f32 %v738_v2, %v3693_v8  ;;  %v740_v58 = vpop.f32.mrb[62].mxu0 }
 0x22c   : > { %v2857_v30 = vpop.eup %2856  ;;  %2876 = vrcp.f32 %v989_v25  ;;  %v1174_v32 = vmul.f32 %v2855_v52, %v4002_v43  ;;  %v2314_v41 = vmul.f32 -1.442695, %v4092_v44  ;;  %v742_v62 = vpop.f32.mrb[63].mxu0  ;;  %v4105_v14 = vadd.f32 %v740_v58, %v3691_v7 }
 0x22d   : > { %v2859_v1 = vpop.eup %2858  ;;  %v1175_v18 = vmul.f32 %v2857_v30, %v4009_v55  ;;  %2878 = vrcp.f32 %v990_v34  ;;  %v2315_v31 = vmul.f32 -1.442695, %v4096_v19  ;;  %v4110_v55 = vadd.f32 %v742_v62, %v3693_v8 }
 0x22e   : > { %v2861_v0 = vpop.eup %2860  ;;  %v1488_v6 = vmul.f32 %v3867_v27, %v1174_v32  ;;  %v1176_v11 = vmul.f32 %v2859_v1, %v4013_v63  ;;  %2880 = vpow2.f32 %v2312_v13  ;;  %v2316_v10 = vmul.f32 -1.442695, %v4105_v14 }
 0x22f   : > { %v2863_v43 = vpop.eup %2862  ;;  %1521 = vst [vmem:[%s3786_s22 + $0xb8] sm:$0xff] %v1175_v18  ;;  %v1177_v33 = vmul.f32 %v2861_v0, %v4020_v20  ;;  %2882 = vpow2.f32 %v2313_v12  ;;  %v2317_v16 = vmul.f32 -1.442695, %v4110_v55 }
 0x230   : > { %v2865_v17 = vpop.eup %2864  ;;  %v991_v4 = vadd.f32 1.0, %v2863_v43  ;;  %v1489_v22 = vmul.f32 %v3876_v57, %v1176_v11  ;;  %2884 = vpow2.f32 %v2314_v41 }
 0x231   : > { %v2867_v27 = vpop.eup %2866  ;;  %1522 = vst [vmem:[%s3786_s22 + $0xc0] sm:$0xff] %v1177_v33  ;;  %v992_v63 = vadd.f32 1.0, %v2865_v17  ;;  %2886 = vpow2.f32 %v2315_v31 }
 0x232   : > { %v2869_v28 = vpop.eup %2868  ;;  %2888 = vrcp.f32 %v991_v4  ;;  %v993_v7 = vadd.f32 1.0, %v2867_v27  ;;  %v1541_v35 = vpack.c.bf16 %v1489_v22, %v1488_v6 }
 0x233   : > { %v2871_v20 = vpop.eup %2870  ;;  %2890 = vrcp.f32 %v992_v63  ;;  %v994_v8 = vadd.f32 1.0, %v2869_v28 }
 0x234   : > { %v2873_v38 = vpop.eup %2872  ;;  %2892 = vrcp.f32 %v993_v7  ;;  %2511 = vmatmul.mubr.bf16.gmra.mrb[52].mxu1 %v1541_v35  ;;  %v1178_v57 = vmul.f32 %v2871_v20, %v4027_v51 }
 0x235   : > { %v2875_v45 = vpop.eup %2874  ;;  %v1179_v46 = vmul.f32 %v2873_v38, %v4032_v9  ;;  %2894 = vrcp.f32 %v994_v8 }
 0x236   : > { %v2877_v53 = vpop.eup %2876  ;;  %2896 = vpow2.f32 %v2316_v10  ;;  %v1490_v54 = vmul.f32 %v3903_v29, %v1178_v57  ;;  %v1180_v37 = vmul.f32 %v2875_v45, %v4036_v61 }
 0x237   : > { %v2879_v48 = vpop.eup %2878  ;;  %1523 = vst [vmem:[%s3786_s22 + $0xc8] sm:$0xff] %v1179_v46  ;;  %v1181_v49 = vmul.f32 %v2877_v53, %v4044_v5  ;;  %2898 = vpow2.f32 %v2317_v16 }
 0x238   : > { %v2881_v23 = vpop.eup %2880  ;;  %v1182_v25 = vmul.f32 %v2879_v48, %v4048_v21  ;;  %v1491_v51 = vmul.f32 %v3911_v59, %v1180_v37 }
 0x239   : > { %v2883_v13 = vpop.eup %2882  ;;  %1524 = vst [vmem:[%s3786_s22 + $0xd0] sm:$0xff] %v1181_v49  ;;  %v995_v9 = vadd.f32 1.0, %v2881_v23 }
 0x23a   : > { %v2885_v2 = vpop.eup %2884  ;;  %v996_v52 = vadd.f32 1.0, %v2883_v13  ;;  %v1492_v34 = vmul.f32 %v3897_v24, %v1182_v25  ;;  %v1542_v29 = vpack.c.bf16 %v1491_v51, %v1490_v54 }
 0x23b   : > { %v2887_v61 = vpop.eup %2886  ;;  %2900 = vrcp.f32 %v995_v9  ;;  %v997_v12 = vadd.f32 1.0, %v2885_v2 }
 0x23c   : > { %v2889_v58 = vpop.eup %2888  ;;  %2902 = vrcp.f32 %v996_v52  ;;  %v998_v5 = vadd.f32 1.0, %v2887_v61  ;;  %2514 = vmatprep.mubr.bf16.mxu1 %v1542_v29 }
 0x23d   : > { %v2891_v21 = vpop.eup %2890  ;;  %v1183_v59 = vmul.f32 %v2889_v58, %v4054_v15  ;;  %2904 = vrcp.f32 %v997_v12 }
 0x23e   : > { %v2893_v30 = vpop.eup %2892  ;;  %2906 = vrcp.f32 %v998_v5  ;;  %v1184_v32 = vmul.f32 %v2891_v21, %v4062_v47 }
 0x23f   : > { %v2895_v41 = vpop.eup %2894  ;;  %1525 = vst [vmem:[%s3786_s22 + $0xd8] sm:$0xff] %v1183_v59  ;;  %v1185_v24 = vmul.f32 %v2893_v30, %v4069_v36 }
 0x240   : > { %v2897_v62 = vpop.eup %2896  ;;  %v1493_v1 = vmul.f32 %v3908_v50, %v1184_v32  ;;  %v1186_v18 = vmul.f32 %v2895_v41, %v4073_v3 }
 0x241   : > { %v2899_v31 = vpop.eup %2898  ;;  %1526 = vst [vmem:[%s3786_s22 + $0xe0] sm:$0xff] %v1185_v24  ;;  %v999_v0 = vadd.f32 1.0, %v2897_v62 }
 0x242   : > { %v1000_v6 = vadd.f32 1.0, %v2899_v31  ;;  %v1543_v15 = vpack.c.bf16 %v1493_v1, %v1492_v34  ;;  %v1494_v11 = vmul.f32 %v3936_v42, %v1186_v18 }
 0x243   : > { %2908 = vrcp.f32 %v999_v0 }
 0x244   : > { %2910 = vrcp.f32 %v1000_v6  ;;  %2515 = vmatmul.mubr.bf16.gmra.mrb[56].mxu1 %v1543_v15 }
 0x245   : > { %v2901_v47 = vpop.eup %2900 }
 0x246   : > { %v2903_v43 = vpop.eup %2902  ;;  %v1187_v36 = vmul.f32 %v2901_v47, %v4083_v56 }
 0x247   : > { %v2905_v50 = vpop.eup %2904  ;;  %v1188_v3 = vmul.f32 %v2903_v43, %v4087_v26 }
 0x248   : > { %v2907_v33 = vpop.eup %2906  ;;  %1527 = vst [vmem:[%s3786_s22 + $0xe8] sm:$0xff] %v1187_v36  ;;  %v1189_v17 = vmul.f32 %v2905_v50, %v4092_v44 }
 0x249   : > { %v1190_v4 = vmul.f32 %v2907_v33, %v4096_v19  ;;  %v1495_v22 = vmul.f32 %v3942_v39, %v1188_v3 }
 0x24a   : > { %1528 = vst [vmem:[%s3786_s22 + $0xf0] sm:$0xff] %v1189_v17 }
 0x24b   : > { %v1496_v42 = vmul.f32 %v3930_v40, %v1190_v4  ;;  %v1544_v27 = vpack.c.bf16 %v1495_v22, %v1494_v11 }
 0x24d   : > { %v2909_v63 = vpop.eup %2908  ;;  %2518 = vmatprep.mubr.bf16.mxu1 %v1544_v27 }
 0x24e   : > { %v2911_v28 = vpop.eup %2910  ;;  %v1191_v56 = vmul.f32 %v2909_v63, %v4105_v14 }
 0x24f   : > { %v1192_v7 = vmul.f32 %v2911_v28, %v4110_v55 }
 0x250   : > { %1529 = vst [vmem:[%s3786_s22 + $0xf8] sm:$0xff] %v1191_v56 }
 0x251   : > { %v1497_v26 = vmul.f32 %v3939_v60, %v1192_v7 }
 0x253   : > { %v1545_v35 = vpack.c.bf16 %v1497_v26, %v1496_v42 }
 0x255   : > { %2519 = vmatmul.mubr.bf16.gmra.mrb[60].mxu1 %v1545_v35 }
 0x2b2   : > { %v4146_v44 = vpop.f32.mrb[32].mxu1 }
 0x2b3   : > { %v2336_v39 = vmul.f32 -1.442695, %v4146_v44  ;;  %v4149_v19 = vpop.f32.mrb[33].mxu1 }
 0x2b4   : > { %v2334_v40 = vmul.f32 -1.442695, %v4149_v19  ;;  %v4152_v10 = vpop.f32.mrb[34].mxu1 }
 0x2b5   : > { %2912 = vpow2.f32 %v2336_v39  ;;  %v2337_v14 = vmul.f32 -1.442695, %v4152_v10  ;;  %v4155_v20 = vpop.f32.mrb[35].mxu1 }
 0x2b6   : > { %2914 = vpow2.f32 %v2334_v40  ;;  %v2335_v60 = vmul.f32 -1.442695, %v4155_v20 }
 0x2b7   : > { %2916 = vpow2.f32 %v2337_v14 }
 0x2b8   : > { %2918 = vpow2.f32 %v2335_v60 }
 0x2bf   : > { %v2913_v55 = vpop.eup %2912 }
 0x2c0   : > { %v2915_v8 = vpop.eup %2914  ;;  %v1869_v16 = vadd.f32 1.0, %v2913_v55 }
 0x2c1   : > { %v2917_v38 = vpop.eup %2916  ;;  %v1867_v57 = vadd.f32 1.0, %v2915_v8 }
 0x2c2   : > { %v2919_v45 = vpop.eup %2918  ;;  %2920 = vrcp.f32 %v1869_v16  ;;  %v1870_v46 = vadd.f32 1.0, %v2917_v38 }
 0x2c3   : > { %2922 = vrcp.f32 %v1867_v57  ;;  %v1868_v53 = vadd.f32 1.0, %v2919_v45  ;;  %v4158_v54 = vpop.f32.mrb[36].mxu1 }
 0x2c4   : > { %2924 = vrcp.f32 %v1870_v46  ;;  %v2340_v37 = vmul.f32 -1.442695, %v4158_v54  ;;  %v4161_v48 = vpop.f32.mrb[37].mxu1 }
 0x2c5   : > { %2926 = vrcp.f32 %v1868_v53  ;;  %v2338_v49 = vmul.f32 -1.442695, %v4161_v48  ;;  %v4164_v23 = vpop.f32.mrb[38].mxu1 }
 0x2c6   : > { %2928 = vpow2.f32 %v2340_v37  ;;  %v2341_v25 = vmul.f32 -1.442695, %v4164_v23  ;;  %v4167_v51 = vpop.f32.mrb[39].mxu1 }
 0x2c7   : > { %2930 = vpow2.f32 %v2338_v49  ;;  %v2339_v13 = vmul.f32 -1.442695, %v4167_v51 }
 0x2c8   : > { %2932 = vpow2.f32 %v2341_v25 }
 0x2c9   : > { %2934 = vpow2.f32 %v2339_v13 }
 0x2cc   : > { %v2921_v9 = vpop.eup %2920 }
 0x2cd   : > { %3197 = shalt.err (!%p3194_p8)
}
 0x2ce   : > { %s3198_s11 = scalar_lea.hbm %s4177_s14, 4096  ;;  %s3202_s10 = scalar_lea.hbm %s4311_s6, 12288 }
 0x2cf   : > { %p3199_p0 = scmp.ne.s32.totalorder %s4177_s14, %s3198_s11  ;;  %p3203_p13 = scmp.lt.u32.totalorder %s4177_s14, %s4311_s6 }
 0x2d0   : > { %p3204_p3 = scmp.lt.u32.totalorder %s3202_s10, %s3198_s11  ;;  %p3206_p9 = scmp.lt.u32.totalorder %s3198_s11, %s4177_s14 }
 0x2d1   : > { %p3200_p2 = pnand %p3199_p0, %p3487_p11 }
 0x2d2   : > { %p3205_p7 = por %p3204_p3, %p3203_p13 }
 0x2d3   : > { %p3201_p10 = pneg %p3200_p2 }
 0x2d4   : > { %p3207_p12 = por %p3206_p9, %p3205_p7 }
 0x2d6   : > { %p3208_p5 = pnand %p3207_p12, %p3201_p10 }
 0x2d8   : > { %3211 = shalt.err (!%p3208_p5)
}
 0x2d9   : > { %s3307_s29 = smov 128   ;;  %s3308_s22 = smov 8   ;;  %v2923_v2 = vpop.eup %2922  ;;  %v1965_v52 = vmul.f32 %v2921_v9, %v4146_v44  ;;  %v2500_v1 = vpop.f32.mrb[40].mxu1 }
 0x2da   : > { %2538 = dma.vmem_to_hbm [thread:$0]  (%p3487_p11), %s4179_s19, 4096, %s4177_s14, %s2028_s4, %s3307_s29, %s3307_s29, %s3308_s22   ;;  %v2925_v34 = vpop.eup %2924  ;;  %v1963_v29 = vmul.f32 %v2923_v2, %v4149_v19  ;;  %v2344_v18 = vmul.f32 -1.442695, %v2500_v1  ;;  %v1676_v31 = vpop.f32.mrb[41].mxu1 }
 0x2db   : > { %v2927_v61 = vpop.eup %2926  ;;  %s4211_s16 = scalar_lea.vmem [#allocation12], %s3582_s2  ;;  %v1966_v12 = vmul.f32 %v2925_v34, %v4152_v10  ;;  %v2342_v0 = vmul.f32 -1.442695, %v1676_v31  ;;  %v2501_v6 = vpop.f32.mrb[42].mxu1  ;;  %s4255_s14 = scalar_lea.hbm %s4312_s7, %s2376_s13 }
 0x2dc   : > { %1997 = vst [vmem:[%s4211_s16 + $0x10] sm:$0xff] %v1965_v52  ;;  %v2929_v58 = vpop.eup %2928  ;;  %1995 = vst [vmem:[%s4211_s16] sm:$0xff] %v1963_v29  ;;  %v1964_v5 = vmul.f32 %v2927_v61, %v4155_v20  ;;  %v2345_v15 = vmul.f32 -1.442695, %v2501_v6  ;;  %v1679_v11 = vpop.f32.mrb[43].mxu1  ;;  %s2062_s2 = sshll.u32 %s4211_s16, 4  ;;  %s2033_s4 = scalar_lea.sflag [#allocation13], %s3579_s12  ;;  %s4257_s2 = int_to_ptr.vmem [resolvable:$true] %s2062_s2 }
 0x2dd   : > { %v2931_v21 = vpop.eup %2930  ;;  %1998 = vst [vmem:[%s4211_s16 + $0x18] sm:$0xff] %v1966_v12  ;;  %v1873_v59 = vadd.f32 1.0, %v2929_v58  ;;  %v2343_v47 = vmul.f32 -1.442695, %v1679_v11  ;;  %s3212_s18 = scalar_lea.vmem %s4257_s2, 4096  ;;  %s3309_s15 = smov [#allocation12]  }
 0x2de   : > { %v2933_v30 = vpop.eup %2932  ;;  %1996 = vst [vmem:[%s4211_s16 + $0x8] sm:$0xff] %v1964_v5  ;;  %v1871_v32 = vadd.f32 1.0, %v2931_v21  ;;  %p3213_p1 = scmp.ne.s32.totalorder %s4257_s2, %s3212_s18  ;;  %s3216_s28 = sshll.u32 %s3309_s15, 4  ;;  %s3217_s28 = int_to_ptr.vmem [resolvable:$false] %s3216_s28 }
 0x2df   : > { %v2935_v41 = vpop.eup %2934  ;;  %2936 = vrcp.f32 %v1873_v59  ;;  %v1874_v24 = vadd.f32 1.0, %v2933_v30  ;;  %s3218_s23 = scalar_lea.vmem %s3217_s28, 8192  ;;  %p3219_p8 = scmp.lt.s32.totalorder %s4257_s2, %s3217_s28 }
 0x2e0   : > { %2938 = vrcp.f32 %v1871_v32  ;;  %v1872_v62 = vadd.f32 1.0, %v2935_v41  ;;  %p3214_p4 = pnand %p3213_p1, %p3487_p11  ;;  %p3220_p0 = scmp.lt.s32.totalorder %s3218_s23, %s3212_s18 }
 0x2e1   : > { %2940 = vrcp.f32 %v1874_v24 }
 0x2e2   : > { %2942 = vrcp.f32 %v1872_v62  ;;  %p3215_p6 = pneg %p3214_p4  ;;  %p3221_p2 = por %p3220_p0, %p3219_p8 }
 0x2e3   : > { %2944 = vpow2.f32 %v2344_v18 }
 0x2e4   : > { %2946 = vpow2.f32 %v2342_v0  ;;  %p3222_p10 = pnand %p3221_p2, %p3215_p6 }
 0x2e5   : > { %2948 = vpow2.f32 %v2345_v15  ;;  %v2504_v44 = vpop.f32.mrb[44].mxu1 }
 0x2e6   : > { %2950 = vpow2.f32 %v2343_v47  ;;  %v2348_v39 = vmul.f32 -1.442695, %v2504_v44  ;;  %v1692_v19 = vpop.f32.mrb[45].mxu1 }
 0x2e7   : > { %v2346_v40 = vmul.f32 -1.442695, %v1692_v19  ;;  %v2505_v10 = vpop.f32.mrb[46].mxu1 }
 0x2e8   : > { %v2349_v14 = vmul.f32 -1.442695, %v2505_v10  ;;  %v1695_v20 = vpop.f32.mrb[47].mxu1 }
 0x2e9   : > { %v2937_v43 = vpop.eup %2936  ;;  %v2347_v60 = vmul.f32 -1.442695, %v1695_v20 }
 0x2ea   : > { %v2939_v36 = vpop.eup %2938  ;;  %v1969_v50 = vmul.f32 %v2937_v43, %v4158_v54 }
 0x2eb   : > { %v2941_v3 = vpop.eup %2940  ;;  %v1967_v33 = vmul.f32 %v2939_v36, %v4161_v48 }
 0x2ec   : > { %v2943_v17 = vpop.eup %2942  ;;  %2001 = vst [vmem:[%s4211_s16 + $0x30] sm:$0xff] %v1969_v50  ;;  %v1970_v4 = vmul.f32 %v2941_v3, %v4164_v23 }
 0x2ed   : > { %v2945_v22 = vpop.eup %2944  ;;  %1999 = vst [vmem:[%s4211_s16 + $0x20] sm:$0xff] %v1967_v33  ;;  %v1968_v42 = vmul.f32 %v2943_v17, %v4167_v51 }
 0x2ee   : > { %v2947_v27 = vpop.eup %2946  ;;  %2002 = vst [vmem:[%s4211_s16 + $0x38] sm:$0xff] %v1970_v4  ;;  %v1877_v63 = vadd.f32 1.0, %v2945_v22 }
 0x2ef   : > { %v2949_v28 = vpop.eup %2948  ;;  %2000 = vst [vmem:[%s4211_s16 + $0x28] sm:$0xff] %v1968_v42  ;;  %v1875_v56 = vadd.f32 1.0, %v2947_v27 }
 0x2f0   : > { %v2951_v7 = vpop.eup %2950  ;;  %2952 = vrcp.f32 %v1877_v63  ;;  %v1878_v26 = vadd.f32 1.0, %v2949_v28 }
 0x2f1   : > { %2954 = vrcp.f32 %v1875_v56  ;;  %v1876_v35 = vadd.f32 1.0, %v2951_v7 }
 0x2f2   : > { %2956 = vrcp.f32 %v1878_v26 }
 0x2f3   : > { %2958 = vrcp.f32 %v1876_v35 }
 0x2f4   : > { %2960 = vpow2.f32 %v2348_v39 }
 0x2f5   : > { %2962 = vpow2.f32 %v2346_v40 }
 0x2f6   : > { %2964 = vpow2.f32 %v2349_v14  ;;  %v2508_v9 = vpop.f32.mrb[48].mxu1 }
 0x2f7   : > { %2966 = vpow2.f32 %v2347_v60  ;;  %v2352_v2 = vmul.f32 -1.442695, %v2508_v9  ;;  %v1708_v52 = vpop.f32.mrb[49].mxu1 }
 0x2f8   : > { %v2350_v34 = vmul.f32 -1.442695, %v1708_v52  ;;  %v2509_v29 = vpop.f32.mrb[50].mxu1 }
 0x2f9   : > { %v2353_v61 = vmul.f32 -1.442695, %v2509_v29  ;;  %v1711_v12 = vpop.f32.mrb[51].mxu1 }
 0x2fa   : > { %v2953_v55 = vpop.eup %2952  ;;  %v2351_v58 = vmul.f32 -1.442695, %v1711_v12 }
 0x2fb   : > { %v2955_v8 = vpop.eup %2954  ;;  %v1973_v16 = vmul.f32 %v2953_v55, %v2500_v1 }
 0x2fc   : > { %v2957_v38 = vpop.eup %2956  ;;  %v1971_v57 = vmul.f32 %v2955_v8, %v1676_v31 }
 0x2fd   : > { %v2959_v45 = vpop.eup %2958  ;;  %2005 = vst [vmem:[%s4211_s16 + $0x50] sm:$0xff] %v1973_v16  ;;  %v1974_v46 = vmul.f32 %v2957_v38, %v2501_v6 }
 0x2fe   : > { %v2961_v53 = vpop.eup %2960  ;;  %2003 = vst [vmem:[%s4211_s16 + $0x40] sm:$0xff] %v1971_v57  ;;  %v1972_v54 = vmul.f32 %v2959_v45, %v1679_v11 }
 0x2ff   : > { %v2963_v37 = vpop.eup %2962  ;;  %2006 = vst [vmem:[%s4211_s16 + $0x58] sm:$0xff] %v1974_v46  ;;  %v1881_v48 = vadd.f32 1.0, %v2961_v53 }
 0x300   : > { %v2965_v49 = vpop.eup %2964  ;;  %2004 = vst [vmem:[%s4211_s16 + $0x48] sm:$0xff] %v1972_v54  ;;  %v1879_v23 = vadd.f32 1.0, %v2963_v37 }
 0x301   : > { %v2967_v25 = vpop.eup %2966  ;;  %2968 = vrcp.f32 %v1881_v48  ;;  %v1882_v51 = vadd.f32 1.0, %v2965_v49 }
 0x302   : > { %2970 = vrcp.f32 %v1879_v23  ;;  %v1880_v13 = vadd.f32 1.0, %v2967_v25 }
 0x303   : > { %2972 = vrcp.f32 %v1882_v51 }
 0x304   : > { %2974 = vrcp.f32 %v1880_v13 }
 0x305   : > { %2976 = vpow2.f32 %v2352_v2 }
 0x306   : > { %2978 = vpow2.f32 %v2350_v34 }
 0x307   : > { %2980 = vpow2.f32 %v2353_v61  ;;  %v2512_v43 = vpop.f32.mrb[52].mxu1 }
 0x308   : > { %2982 = vpow2.f32 %v2351_v58  ;;  %v2356_v36 = vmul.f32 -1.442695, %v2512_v43  ;;  %v1724_v50 = vpop.f32.mrb[53].mxu1 }
 0x309   : > { %v2354_v3 = vmul.f32 -1.442695, %v1724_v50  ;;  %v2513_v33 = vpop.f32.mrb[54].mxu1 }
 0x30a   : > { %v2357_v17 = vmul.f32 -1.442695, %v2513_v33  ;;  %v1727_v4 = vpop.f32.mrb[55].mxu1 }
 0x30b   : > { %v2969_v5 = vpop.eup %2968  ;;  %v2355_v22 = vmul.f32 -1.442695, %v1727_v4 }
 0x30c   : > { %v2971_v21 = vpop.eup %2970  ;;  %v1977_v59 = vmul.f32 %v2969_v5, %v2504_v44 }
 0x30d   : > { %v2973_v30 = vpop.eup %2972  ;;  %v1975_v32 = vmul.f32 %v2971_v21, %v1692_v19 }
 0x30e   : > { %v2975_v41 = vpop.eup %2974  ;;  %2009 = vst [vmem:[%s4211_s16 + $0x70] sm:$0xff] %v1977_v59  ;;  %v1978_v24 = vmul.f32 %v2973_v30, %v2505_v10 }
 0x30f   : > { %v2977_v62 = vpop.eup %2976  ;;  %2007 = vst [vmem:[%s4211_s16 + $0x60] sm:$0xff] %v1975_v32  ;;  %v1976_v1 = vmul.f32 %v2975_v41, %v1695_v20 }
 0x310   : > { %v2979_v18 = vpop.eup %2978  ;;  %2010 = vst [vmem:[%s4211_s16 + $0x78] sm:$0xff] %v1978_v24  ;;  %v1885_v31 = vadd.f32 1.0, %v2977_v62 }
 0x311   : > { %v2981_v0 = vpop.eup %2980  ;;  %2008 = vst [vmem:[%s4211_s16 + $0x68] sm:$0xff] %v1976_v1  ;;  %v1883_v6 = vadd.f32 1.0, %v2979_v18 }
 0x312   : > { %v2983_v15 = vpop.eup %2982  ;;  %2984 = vrcp.f32 %v1885_v31  ;;  %v1886_v11 = vadd.f32 1.0, %v2981_v0 }
 0x313   : > { %2986 = vrcp.f32 %v1883_v6  ;;  %v1884_v47 = vadd.f32 1.0, %v2983_v15 }
 0x314   : > { %2988 = vrcp.f32 %v1886_v11 }
 0x315   : > { %2990 = vrcp.f32 %v1884_v47 }
 0x316   : > { %2992 = vpow2.f32 %v2356_v36 }
 0x317   : > { %2994 = vpow2.f32 %v2354_v3  ;;  %v2516_v60 = vpop.f32.mrb[56].mxu1 }
 0x318   : > { %2996 = vpow2.f32 %v2357_v17  ;;  %v2360_v8 = vmul.f32 -1.442695, %v2516_v60  ;;  %v1740_v16 = vpop.f32.mrb[57].mxu1 }
 0x319   : > { %2998 = vpow2.f32 %v2355_v22  ;;  %v2358_v38 = vmul.f32 -1.442695, %v1740_v16  ;;  %v2517_v57 = vpop.f32.mrb[58].mxu1 }
 0x31a   : > { %v2361_v45 = vmul.f32 -1.442695, %v2517_v57  ;;  %v1743_v46 = vpop.f32.mrb[59].mxu1 }
 0x31b   : > { %v2359_v53 = vmul.f32 -1.442695, %v1743_v46 }
 0x31c   : > { %v2985_v42 = vpop.eup %2984 }
 0x31d   : > { %v2987_v27 = vpop.eup %2986  ;;  %v1981_v63 = vmul.f32 %v2985_v42, %v2508_v9 }
 0x31e   : > { %v2989_v28 = vpop.eup %2988  ;;  %v1979_v56 = vmul.f32 %v2987_v27, %v1708_v52 }
 0x31f   : > { %v2991_v7 = vpop.eup %2990  ;;  %2013 = vst [vmem:[%s4211_s16 + $0x90] sm:$0xff] %v1981_v63  ;;  %v1982_v26 = vmul.f32 %v2989_v28, %v2509_v29 }
 0x320   : > { %v2993_v35 = vpop.eup %2992  ;;  %2011 = vst [vmem:[%s4211_s16 + $0x80] sm:$0xff] %v1979_v56  ;;  %v1980_v44 = vmul.f32 %v2991_v7, %v1711_v12 }
 0x321   : > { %v2995_v39 = vpop.eup %2994  ;;  %2014 = vst [vmem:[%s4211_s16 + $0x98] sm:$0xff] %v1982_v26  ;;  %v1889_v19 = vadd.f32 1.0, %v2993_v35 }
 0x322   : > { %v2997_v40 = vpop.eup %2996  ;;  %2012 = vst [vmem:[%s4211_s16 + $0x88] sm:$0xff] %v1980_v44  ;;  %v1887_v10 = vadd.f32 1.0, %v2995_v39 }
 0x323   : > { %v2999_v14 = vpop.eup %2998  ;;  %3000 = vrcp.f32 %v1889_v19  ;;  %v1890_v20 = vadd.f32 1.0, %v2997_v40 }
 0x324   : > { %3002 = vrcp.f32 %v1887_v10  ;;  %v1888_v55 = vadd.f32 1.0, %v2999_v14 }
 0x325   : > { %3004 = vrcp.f32 %v1890_v20 }
 0x326   : > { %3006 = vrcp.f32 %v1888_v55 }
 0x327   : > { %3008 = vpow2.f32 %v2360_v8 }
 0x328   : > { %3010 = vpow2.f32 %v2358_v38  ;;  %v2520_v58 = vpop.f32.mrb[60].mxu1 }
 0x329   : > { %3012 = vpow2.f32 %v2361_v45  ;;  %v2364_v21 = vmul.f32 -1.442695, %v2520_v58  ;;  %v1756_v59 = vpop.f32.mrb[61].mxu1 }
 0x32a   : > { %3014 = vpow2.f32 %v2359_v53  ;;  %v2362_v30 = vmul.f32 -1.442695, %v1756_v59  ;;  %v2521_v32 = vpop.f32.mrb[62].mxu1 }
 0x32b   : > { %v2365_v41 = vmul.f32 -1.442695, %v2521_v32  ;;  %v1759_v24 = vpop.f32.mrb[63].mxu1 }
 0x32c   : > { %v2363_v62 = vmul.f32 -1.442695, %v1759_v24 }
 0x32d   : > { %v3001_v54 = vpop.eup %3000 }
 0x32e   : > { %v3003_v37 = vpop.eup %3002  ;;  %v1985_v48 = vmul.f32 %v3001_v54, %v2512_v43 }
 0x32f   : > { %v3005_v49 = vpop.eup %3004  ;;  %v1983_v23 = vmul.f32 %v3003_v37, %v1724_v50 }
 0x330   : > { %v3007_v25 = vpop.eup %3006  ;;  %2017 = vst [vmem:[%s4211_s16 + $0xb0] sm:$0xff] %v1985_v48  ;;  %v1986_v51 = vmul.f32 %v3005_v49, %v2513_v33 }
 0x331   : > { %v3009_v13 = vpop.eup %3008  ;;  %2015 = vst [vmem:[%s4211_s16 + $0xa0] sm:$0xff] %v1983_v23  ;;  %v1984_v9 = vmul.f32 %v3007_v25, %v1727_v4 }
 0x332   : > { %v3011_v2 = vpop.eup %3010  ;;  %2018 = vst [vmem:[%s4211_s16 + $0xb8] sm:$0xff] %v1986_v51  ;;  %v1893_v52 = vadd.f32 1.0, %v3009_v13 }
 0x333   : > { %v3013_v34 = vpop.eup %3012  ;;  %2016 = vst [vmem:[%s4211_s16 + $0xa8] sm:$0xff] %v1984_v9  ;;  %v1891_v29 = vadd.f32 1.0, %v3011_v2 }
 0x334   : > { %v3015_v61 = vpop.eup %3014  ;;  %3016 = vrcp.f32 %v1893_v52  ;;  %v1894_v12 = vadd.f32 1.0, %v3013_v34 }
 0x335   : > { %3018 = vrcp.f32 %v1891_v29  ;;  %v1892_v5 = vadd.f32 1.0, %v3015_v61 }
 0x336   : > { %3020 = vrcp.f32 %v1894_v12 }
 0x337   : > { %3022 = vrcp.f32 %v1892_v5 }
 0x338   : > { %3024 = vpow2.f32 %v2364_v21 }
 0x339   : > { %3026 = vpow2.f32 %v2362_v30 }
 0x33a   : > { %3028 = vpow2.f32 %v2365_v41 }
 0x33b   : > { %3030 = vpow2.f32 %v2363_v62 }
 0x33e   : > { %v3017_v1 = vpop.eup %3016 }
 0x33f   : > { %v3019_v18 = vpop.eup %3018  ;;  %v1989_v31 = vmul.f32 %v3017_v1, %v2516_v60 }
 0x340   : > { %v3021_v0 = vpop.eup %3020  ;;  %v1987_v6 = vmul.f32 %v3019_v18, %v1740_v16 }
 0x341   : > { %v3023_v15 = vpop.eup %3022  ;;  %2021 = vst [vmem:[%s4211_s16 + $0xd0] sm:$0xff] %v1989_v31  ;;  %v1990_v11 = vmul.f32 %v3021_v0, %v2517_v57 }
 0x342   : > { %v3025_v47 = vpop.eup %3024  ;;  %2019 = vst [vmem:[%s4211_s16 + $0xc0] sm:$0xff] %v1987_v6  ;;  %v1988_v43 = vmul.f32 %v3023_v15, %v1743_v46 }
 0x343   : > { %v3027_v36 = vpop.eup %3026  ;;  %2022 = vst [vmem:[%s4211_s16 + $0xd8] sm:$0xff] %v1990_v11  ;;  %v1897_v50 = vadd.f32 1.0, %v3025_v47 }
 0x344   : > { %v3029_v3 = vpop.eup %3028  ;;  %2020 = vst [vmem:[%s4211_s16 + $0xc8] sm:$0xff] %v1988_v43  ;;  %v1895_v33 = vadd.f32 1.0, %v3027_v36 }
 0x345   : > { %v3031_v17 = vpop.eup %3030  ;;  %3032 = vrcp.f32 %v1897_v50  ;;  %v1898_v4 = vadd.f32 1.0, %v3029_v3 }
 0x346   : > { %3034 = vrcp.f32 %v1895_v33  ;;  %v1896_v22 = vadd.f32 1.0, %v3031_v17 }
 0x347   : > { %3036 = vrcp.f32 %v1898_v4 }
 0x348   : > { %3038 = vrcp.f32 %v1896_v22 }
 0x34f   : > { %v3033_v42 = vpop.eup %3032 }
 0x350   : > { %v3035_v27 = vpop.eup %3034  ;;  %v1993_v63 = vmul.f32 %v3033_v42, %v2520_v58 }
 0x351   : > { %v3037_v28 = vpop.eup %3036  ;;  %v1991_v56 = vmul.f32 %v3035_v27, %v1756_v59 }
 0x352   : > { %v3039_v7 = vpop.eup %3038  ;;  %2025 = vst [vmem:[%s4211_s16 + $0xf0] sm:$0xff] %v1993_v63  ;;  %v1994_v26 = vmul.f32 %v3037_v28, %v2521_v32 }
 0x353   : > { %2023 = vst [vmem:[%s4211_s16 + $0xe0] sm:$0xff] %v1991_v56  ;;  %v1992_v35 = vmul.f32 %v3039_v7, %v1759_v24 }
 0x354   : > { %2026 = vst [vmem:[%s4211_s16 + $0xf8] sm:$0xff] %v1994_v26 }
 0x355   : > { %2024 = vst [vmem:[%s4211_s16 + $0xe8] sm:$0xff] %v1992_v35 }
 0x356   : > { %3225 = shalt.err (!%p3222_p10)
}
 0x357   : > { %s3226_s13 = scalar_lea.hbm %s4255_s14, 4096  ;;  %s3230_s8 = scalar_lea.hbm %s4312_s7, 12288 }
 0x358   : > { %p3227_p13 = scmp.ne.s32.totalorder %s4255_s14, %s3226_s13  ;;  %p3231_p9 = scmp.lt.u32.totalorder %s4255_s14, %s4312_s7 }
 0x359   : > { %p3232_p12 = scmp.lt.u32.totalorder %s3230_s8, %s3226_s13  ;;  %p3234_p1 = scmp.lt.u32.totalorder %s3226_s13, %s4255_s14 }
 0x35a   : > { %p3228_p3 = pnand %p3227_p13, %p3487_p11 }
 0x35b   : > { %p3233_p5 = por %p3232_p12, %p3231_p9 }
 0x35c   : > { %p3229_p7 = pneg %p3228_p3 }
 0x35d   : > { %p3235_p4 = por %p3234_p1, %p3233_p5 }
 0x35f   : > { %p3236_p6 = pnand %p3235_p4, %p3229_p7 }
 0x361   : > { %3239 = shalt.err (!%p3236_p6)
}
 0x362   : > { %2539 = dma.vmem_to_hbm [thread:$0]  (%p3487_p11), %s4257_s2, 4096, %s4255_s14, %s2033_s4, %s3307_s29, %s3307_s29, %s3308_s22  }
 0x363 PF: > { %s4347_s5 = sld [smem:[#allocation20_spill]]  ;;  %p2573_p8 = scmp.ge.s32.totalorder %s3294_s27, 2 }
 0x364   : > { %s2077_s30 = sand.u32 1, %s3282_s24  }
 0x365   : > { %s2078_s16 = scalar_lea.sflag [#allocation4], %s2077_s30 }
 0x369   : > { %p4348_p0 = scmp.ne.s32.totalorder %s4347_s5, 0 }
 0x36b   : > { %p2560_p2 = pnand %p2573_p8, %p4348_p0 }
 0x36d   : > { %3273 = dma.done.wait (!%p2560_p2), %s2078_s16, 4096  }
 0x36e   : > { %3275 = vsyncadd (!%p2560_p2), %s2078_s16, 4294963200  ;;  %s2087_s20 = scalar_lea.sflag [#allocation13], %s2077_s30 }
 0x36f   : > { %3277 = dma.done.wait (!%p2560_p2), %s2087_s20, 4096  }
 0x370   : > { %3279 = vsyncadd (!%p2560_p2), %s2087_s20, 4294963200  ;;  %s4349_s12 = sld [smem:[#allocation21_spill]]  ;;  %p28_p11 = scmp.ge.s32.totalorder %s3455_s21, 5  }
 0x371   : > { %s4350_s24 = smov %s3286_s25  ;;  %s4351_s25 = smov %s3290_s26 }
 0x372   : > { %s4353_s27 = smov %s3455_s21  ;;  %30 = sbr.rel (!%p28_p11) target bundleno = 15 (0xf), region = 131 }
 0x376   : > { %s4352_s26 = smov %s4349_s12 }
 0x379   :  { %2092 = vsyncpa [#allocation3], 1 }
 0x37a   :  { %2094 = vsyncpa [#allocation3 + $0x1], 1 }
 0x37b   :  { %2095 = vsyncpa [#allocation6], 1 }
 0x37c   :  { %2097 = vsyncpa [#allocation6 + $0x1], 1 }
 0x37d   :  { %2098 = vsyncpa [#allocation9], 1 }
 0x37e   :  { %2099 = vsyncpa [#allocation4], 1 }
 0x37f   :  { %2101 = vsyncpa [#allocation4 + $0x1], 1 }
 0x380   :  { %2102 = vsyncpa [#allocation13], 1 }
 0x381   :  { %2104 = vsyncpa [#allocation13 + $0x1], 1 }

</bundles_post_ra>
